<compile_context>
chip_gen: v6e
topology: v6e:2x2x1
jax: 0.10.0
libtpu: 0.0.40
codegen_flags: <defaults>
</compile_context>

<pallas_src>
import functools
import math

import jax
import jax.numpy as jnp
from jax import lax
from jax.experimental import pallas as pl
from jax.experimental.pallas import tpu as pltpu

NEG_SLOPE = 0.01  # F.leaky_relu default


def _leaky(v):
    return jnp.where(v > 0, v, NEG_SLOPE * v)


def _round_up(x, m):
    return (x + m - 1) // m * m


def _pad_last(x, mult=128):
    k = x.shape[-1]
    kp = _round_up(k, mult)
    if kp == k:
        return x
    return jnp.pad(x, [(0, 0)] * (x.ndim - 1) + [(0, kp - k)])


def _pad_rows(w, mult=128):
    k = w.shape[0]
    kp = _round_up(k, mult)
    if kp == k:
        return w
    return jnp.pad(w, ((0, kp - k), (0, 0)))


def _pick_block_k(k_dim, target=2048, align=128):
    """Largest multiple of `align` <= target that divides k_dim (else k_dim)."""
    if k_dim <= target:
        return k_dim
    bk = (target // align) * align
    while bk >= align and k_dim % bk:
        bk -= align
    return bk if bk >= align else k_dim


# ----------------------------------------------------------------------------
# Pallas kernel 1: tiled  y = leaky_relu(x @ w + b)   (bf16 MXU, f32 accum)
# ----------------------------------------------------------------------------
def _linear_kernel(x_ref, w_ref, b_ref, o_ref, acc_ref, *, act):
    @pl.when(pl.program_id(1) == 0)
    def _():
        acc_ref[...] = jnp.zeros_like(acc_ref)

    acc_ref[...] += jnp.dot(x_ref[...].astype(jnp.bfloat16), w_ref[...],
                            preferred_element_type=jnp.float32)

    @pl.when(pl.program_id(1) == pl.num_programs(1) - 1)
    def _():
        y = acc_ref[...] + b_ref[...]
        if act:
            y = _leaky(y)
        o_ref[...] = y.astype(o_ref.dtype)


def pallas_linear(x, w_bf16, b_f32, act=True, *, block_m=512, block_k=2048):
    """x: (M, K) f32, w: (K, N) bf16, b: (1, N) f32 -> (M, N) f32."""
    M, K = x.shape
    Kw, N = w_bf16.shape
    assert K == Kw and b_f32.shape == (1, N)
    bm = M if M <= block_m else block_m          # full-M single block when small
    bk = _pick_block_k(K, block_k)               # K is lane-padded -> divides
    grid = (pl.cdiv(M, bm), K // bk)
    return pl.pallas_call(
        functools.partial(_linear_kernel, act=act),
        out_shape=jax.ShapeDtypeStruct((M, N), jnp.float32),
        grid_spec=pltpu.PrefetchScalarGridSpec(
            num_scalar_prefetch=0,
            grid=grid,
            in_specs=[
                pl.BlockSpec((bm, bk), lambda i, k: (i, k)),
                pl.BlockSpec((bk, N), lambda i, k: (k, 0)),
                pl.BlockSpec((1, N), lambda i, k: (0, 0)),
            ],
            out_specs=pl.BlockSpec((bm, N), lambda i, k: (i, 0)),
            scratch_shapes=[pltpu.VMEM((bm, N), jnp.float32)],
        ),
        compiler_params=pltpu.CompilerParams(
            dimension_semantics=("parallel", "arbitrary")),
    )(x, w_bf16, b_f32)


# ----------------------------------------------------------------------------
# Conv2d + leaky_relu = patch extraction (XLA glue) + Pallas matmul (NHWC out)
# ----------------------------------------------------------------------------
def conv2d_leaky(x, w_packed, b, kernel_size, stride, in_nchw):
    """x: NCHW (first layer) or NHWC. Returns NHWC (B, Ho, Wo, O).
    w_packed: (round_up(C*KH*KW, 128), O) bf16, rows in torch OIHW flatten order."""
    dn = ('NCHW', 'OIHW', 'NHWC') if in_nchw else ('NHWC', 'HWIO', 'NHWC')
    # feature index of patches = c*KH*KW + kh*KW + kw  (== torch OIHW flatten)
    p = lax.conv_general_dilated_patches(
        x, (kernel_size, kernel_size), (stride, stride), 'VALID',
        dimension_numbers=dn)                          # (B, Ho, Wo, C*KH*KW)
    B, Ho, Wo, F = p.shape
    p = _pad_last(p.reshape(B * Ho * Wo, F), 128)      # lane-aligned K
    y = pallas_linear(p, w_packed, b, act=True)        # (B*Ho*Wo, O)
    return y.reshape(B, Ho, Wo, -1)                    # NHWC, no transpose


# ----------------------------------------------------------------------------
# Pallas kernel 2: fused tail  (fcs5 + fc1 + fca1 + split-ffc1, no concat)
# ----------------------------------------------------------------------------
def _tail_kernel(h_ref, c_ref, a_ref,
                 w5_ref, b5_ref, wc_ref, bc_ref, wa_ref, ba_ref,
                 wx_ref, wy_ref, wz_ref, bf_ref, o_ref):
    # fcs5: bf16 MXU, f32 accumulate + epilogue
    x5 = _leaky(jnp.dot(h_ref[...].astype(jnp.bfloat16), w5_ref[...],
                        preferred_element_type=jnp.float32) + b5_ref[...])
    # fc1 / fca1: tiny (B,4) matmuls, keep f32
    y = _leaky(jnp.dot(c_ref[...], wc_ref[...],
                       preferred_element_type=jnp.float32) + bc_ref[...])
    z = _leaky(jnp.dot(a_ref[...], wa_ref[...],
                       preferred_element_type=jnp.float32) + ba_ref[...])
    # ffc1 over cat([x5 | y | z]): weight pre-split into its three row blocks,
    # N=1 result computed as VPU multiply + lane reduce.
    out = (x5 * wx_ref[...]).sum(axis=-1, keepdims=True)
    out = out + (y * wy_ref[...]).sum(axis=-1, keepdims=True)
    out = out + (z * wz_ref[...]).sum(axis=-1, keepdims=True)
    o_ref[...] = (out + bf_ref[...]).astype(o_ref.dtype)


def _full_spec(a):
    nd = a.ndim
    return pl.BlockSpec(a.shape, lambda *_: (0,) * nd)


def tail_forward(pp, h, controls_state, action):
    B = h.shape[0]
    args = (h, controls_state, action,
            pp['fcs5_w'], pp['fcs5_b'],
            pp['fc1_w'], pp['fc1_b'],
            pp['fca1_w'], pp['fca1_b'],
            pp['ffc1_wx'], pp['ffc1_wy'], pp['ffc1_wz'], pp['ffc1_b'])
    return pl.pallas_call(
        _tail_kernel,
        out_shape=jax.ShapeDtypeStruct((B, 1), jnp.float32),
        in_specs=[_full_spec(a) for a in args],
        out_specs=pl.BlockSpec((B, 1), lambda *_: (0, 0)),
    )(*args)


# ----------------------------------------------------------------------------
# Parameters (torch layout) and Pallas-friendly repacking
# ----------------------------------------------------------------------------
def conv2d_size_out(size, kernel_size, stride=2):
    return (size - (kernel_size - 1) - 1) // stride + 1


def init_torch_params(key, height, width, channels, action_dim, control_dim):
    """Parameters in PyTorch layout: conv OIHW, linear (out, in)."""
    convw = conv2d_size_out(conv2d_size_out(width, 7), 5)
    convh = conv2d_size_out(conv2d_size_out(height, 7), 5)
    flat = convh * convw * 32
    ks = jax.random.split(key, 14)

    def u(k, shape, fan_in):
        bound = 1.0 / math.sqrt(fan_in)
        return jax.random.uniform(k, shape, jnp.float32, -bound, bound)

    return {
        'convs1_w': u(ks[0], (16, channels, 7, 7), channels * 49),
        'convs1_b': u(ks[1], (16,), channels * 49),
        'convs2_w': u(ks[2], (32, 16, 5, 5), 16 * 25),
        'convs2_b': u(ks[3], (32,), 16 * 25),
        'fcs4_w': u(ks[4], (512, flat), flat),
        'fcs4_b': u(ks[5], (512,), flat),
        'fcs5_w': u(ks[6], (256, 512), 512),
        'fcs5_b': u(ks[7], (256,), 512),
        'fca1_w': u(ks[8], (32, action_dim), action_dim),
        'fca1_b': u(ks[9], (32,), action_dim),
        'fc1_w': u(ks[10], (12, control_dim), control_dim),
        'fc1_b': u(ks[11], (12,), control_dim),
        'ffc1_w': u(ks[12], (1, 300), 300),
        'ffc1_b': u(ks[13], (1,), 300),
    }


def prepare_params(tp, height, width):
    """One-time repack: transpose, K-pad, bf16-cast, fold NCHW flatten into fcs4."""
    convw2 = conv2d_size_out(conv2d_size_out(width, 7), 5)
    convh2 = conv2d_size_out(conv2d_size_out(height, 7), 5)

    def conv_w(w_oihw):
        o = w_oihw.shape[0]
        w2 = w_oihw.reshape(o, -1).T                     # (C*KH*KW, O), OIHW order
        return _pad_rows(w2, 128).astype(jnp.bfloat16)

    # fcs4 acts on torch's NCHW-flattened activations; we keep activations NHWC,
    # so permute the weight's input-feature rows (c,h,w) -> (h,w,c).
    w4 = tp['fcs4_w'].T                                  # (flat, 512), NCHW row order
    w4 = w4.reshape(32, convh2, convw2, 512)
    w4 = jnp.transpose(w4, (1, 2, 0, 3)).reshape(convh2 * convw2 * 32, 512)
    w4 = _pad_rows(w4, 128).astype(jnp.bfloat16)

    ffc1 = tp['ffc1_w']                                  # (1, 300): [x 256 | y 12 | z 32]
    return {
        'c1_w': conv_w(tp['convs1_w']), 'c1_b': tp['convs1_b'].reshape(1, -1),
        'c2_w': conv_w(tp['convs2_w']), 'c2_b': tp['convs2_b'].reshape(1, -1),
        'fcs4_w': w4, 'fcs4_b': tp['fcs4_b'].reshape(1, -1),
        'fcs5_w': tp['fcs5_w'].T.astype(jnp.bfloat16), 'fcs5_b': tp['fcs5_b'].reshape(1, -1),
        'fc1_w': tp['fc1_w'].T, 'fc1_b': tp['fc1_b'].reshape(1, -1),
        'fca1_w': tp['fca1_w'].T, 'fca1_b': tp['fca1_b'].reshape(1, -1),
        'ffc1_wx': ffc1[:, :256], 'ffc1_wy': ffc1[:, 256:268], 'ffc1_wz': ffc1[:, 268:300],
        'ffc1_b': tp['ffc1_b'].reshape(1, 1),
    }


# ----------------------------------------------------------------------------
# Forward passes
# ----------------------------------------------------------------------------
def critic_forward(pp, state, controls_state, action):
    B = state.shape[0]
    x = conv2d_leaky(state, pp['c1_w'], pp['c1_b'], 7, 2, in_nchw=True)   # (B,H1,W1,16)
    x = conv2d_leaky(x, pp['c2_w'], pp['c2_b'], 5, 2, in_nchw=False)      # (B,H2,W2,32)
    # NHWC flatten; fcs4_w rows were permuted so this equals torch's NCHW .view(B,-1)
    x = _pad_last(x.reshape(B, -1), 128)
    x = pallas_linear(x, pp['fcs4_w'], pp['fcs4_b'], act=True)            # (B, 512)
    return tail_forward(pp, x, controls_state, action)                    # fused fcs5+fc1+fca1+ffc1


def reference_forward(tp, state, controls_state, action):
    """Plain-JAX f32 NCHW reference mirroring the PyTorch module exactly."""
    def conv(x, w, b, s):
        y = lax.conv_general_dilated(x, w, (s, s), 'VALID',
                                     dimension_numbers=('NCHW', 'OIHW', 'NCHW'))
        return _leaky(y + b[None, :, None, None])
    x = conv(state, tp['convs1_w'], tp['convs1_b'], 2)
    x = conv(x, tp['convs2_w'], tp['convs2_b'], 2)
    x = x.reshape(x.shape[0], -1)
    x = _leaky(x @ tp['fcs4_w'].T + tp['fcs4_b'])
    x = _leaky(x @ tp['fcs5_w'].T + tp['fcs5_b'])
    y = _leaky(controls_state @ tp['fc1_w'].T + tp['fc1_b'])
    z = _leaky(action @ tp['fca1_w'].T + tp['fca1_b'])
    cat = jnp.concatenate((x, y, z), axis=1)
    return cat @ tp['ffc1_w'].T + tp['ffc1_b']


if __name__ == "__main__":
    # height=width=29, channels=1 -> conv1 12x12x16 -> conv2 4x4x32 -> flat=512
    B, C, H, W = 2, 1, 29, 29
    ACTION_DIM, CONTROL_DIM = 4, 4

    key = jax.random.PRNGKey(0)
    kp, ks, kc, ka = jax.random.split(key, 4)
    torch_params = init_torch_params(kp, H, W, C, ACTION_DIM, CONTROL_DIM)
    pp = prepare_params(torch_params, H, W)

    state = jax.random.normal(ks, (B, C, H, W), jnp.float32)
    controls_state = jax.random.normal(kc, (B, CONTROL_DIM), jnp.float32)
    action = jax.random.normal(ka, (B, ACTION_DIM), jnp.float32)

    out = jax.jit(critic_forward)(pp, state, controls_state, action)
    out = jax.block_until_ready(out)
    assert out.shape == (B, 1), out.shape

    # Sanity check vs. an f32 NCHW reference (loose tol: bf16 MXU inputs).
    ref = reference_forward(torch_params, state, controls_state, action)
    err = float(jnp.max(jnp.abs(out - ref)))
    assert err < 5e-2, f"mismatch vs reference: max abs err = {err}"
    print("KERNEL_OK")
</pallas_src>

<mosaic_0001>
module attributes {stable_mosaic.version = 11 : i64} {
  func.func @_linear_kernel(%arg0: i32, %arg1: i32, %arg2: memref<288x128xf32, #tpu.memory_space<vmem>>, %arg3: memref<128x16xbf16, #tpu.memory_space<vmem>>, %arg4: memref<1x16xf32, #tpu.memory_space<vmem>>, %arg5: memref<288x16xf32, #tpu.memory_space<vmem>>, %arg6: memref<288x16xf32, #tpu.memory_space<vmem>>) attributes {dimension_semantics = [#tpu.dimension_semantics<parallel>, #tpu.dimension_semantics<arbitrary>], iteration_bounds = array<i64: 1, 1>, scalar_prefetch = 0 : i64, scratch_operands = 1 : i64, tpu.core_type = #tpu.core_type<tc>, window_params = [{transform_indices = @transform_0, window_bounds = array<i64: 288, 128>}, {transform_indices = @transform_1, window_bounds = array<i64: 128, 16>}, {pipeline_mode = #tpu.pipeline_mode<synchronous>, transform_indices = @transform_2, window_bounds = array<i64: 1, 16>}, {transform_indices = @transform_3, window_bounds = array<i64: 288, 16>}]} {
    %c0_i32 = arith.constant 0 : i32
    %0 = arith.cmpi eq, %arg1, %c0_i32 : i32
    %1 = arith.extui %0 : i1 to i32
    %c0_i32_0 = arith.constant 0 : i32
    %2 = arith.cmpi ne, %1, %c0_i32_0 : i32
    scf.if %2 {
      %cst_10 = arith.constant 0.000000e+00 : f32
      %13 = vector.broadcast %cst_10 : f32 to vector<288x16xf32>
      %c0_11 = arith.constant 0 : index
      %c0_12 = arith.constant 0 : index
      %14 = vector.load %arg6[%c0_11, %c0_12] : memref<288x16xf32, #tpu.memory_space<vmem>>, vector<288x16xf32>
      tpu.vector_store %arg6[%c0_11, %c0_12], %13 {strides = array<i32>} : memref<288x16xf32, #tpu.memory_space<vmem>>, vector<288x16xf32>,
    } else {
    }
    %c0 = arith.constant 0 : index
    %c0_1 = arith.constant 0 : index
    %3 = vector.load %arg6[%c0, %c0_1] : memref<288x16xf32, #tpu.memory_space<vmem>>, vector<288x16xf32>
    %c0_2 = arith.constant 0 : index
    %c0_3 = arith.constant 0 : index
    %4 = vector.load %arg2[%c0_2, %c0_3] : memref<288x128xf32, #tpu.memory_space<vmem>>, vector<288x128xf32>
    %5 = arith.truncf %4 : vector<288x128xf32> to vector<288x128xbf16>
    %c0_4 = arith.constant 0 : index
    %c0_5 = arith.constant 0 : index
    %6 = vector.load %arg3[%c0_4, %c0_5] : memref<128x16xbf16, #tpu.memory_space<vmem>>, vector<128x16xbf16>
    %cst = arith.constant dense<0.000000e+00> : vector<288x16xf32>
    %7 = tpu.matmul %5, %6, %cst {dimension_numbers = #tpu.dot_dimension_numbers<[1], [0], [0], [1], [0, 0, 1, 1], [], []>} : vector<288x128xbf16>, vector<128x16xbf16>, vector<288x16xf32> -> vector<288x16xf32>
    %8 = arith.addf %3, %7 : vector<288x16xf32>
    %c0_6 = arith.constant 0 : index
    %c0_7 = arith.constant 0 : index
    %9 = vector.load %arg6[%c0_6, %c0_7] : memref<288x16xf32, #tpu.memory_space<vmem>>, vector<288x16xf32>
    tpu.vector_store %arg6[%c0_6, %c0_7], %8 {strides = array<i32>} : memref<288x16xf32, #tpu.memory_space<vmem>>, vector<288x16xf32>,
    %c0_i32_8 = arith.constant 0 : i32
    %10 = arith.cmpi eq, %arg1, %c0_i32_8 : i32
    %11 = arith.extui %10 : i1 to i32
    %c0_i32_9 = arith.constant 0 : i32
    %12 = arith.cmpi ne, %11, %c0_i32_9 : i32
    scf.if %12 {
      %c0_10 = arith.constant 0 : index
      %c0_11 = arith.constant 0 : index
      %13 = vector.load %arg6[%c0_10, %c0_11] : memref<288x16xf32, #tpu.memory_space<vmem>>, vector<288x16xf32>
      %c0_12 = arith.constant 0 : index
      %c0_13 = arith.constant 0 : index
      %14 = vector.load %arg4[%c0_12, %c0_13] : memref<1x16xf32, #tpu.memory_space<vmem>>, vector<1x16xf32>
      %15 = vector.broadcast %14 : vector<1x16xf32> to vector<288x16xf32>
      %16 = arith.addf %13, %15 : vector<288x16xf32>
      %cst_14 = arith.constant 0.000000e+00 : f32
      %17 = vector.broadcast %cst_14 : f32 to vector<288x16xf32>
      %18 = arith.cmpf ogt, %16, %17 : vector<288x16xf32>
      %cst_15 = arith.constant 0.00999999977 : f32
      %19 = vector.broadcast %cst_15 : f32 to vector<288x16xf32>
      %20 = arith.mulf %19, %16 : vector<288x16xf32>
      %21 = arith.select %18, %16, %20 : vector<288x16xi1>, vector<288x16xf32>
      %c0_16 = arith.constant 0 : index
      %c0_17 = arith.constant 0 : index
      %22 = vector.load %arg5[%c0_16, %c0_17] : memref<288x16xf32, #tpu.memory_space<vmem>>, vector<288x16xf32>
      tpu.vector_store %arg5[%c0_16, %c0_17], %21 {strides = array<i32>} : memref<288x16xf32, #tpu.memory_space<vmem>>, vector<288x16xf32>,
    } else {
    }
    return
  }
  func.func @transform_0(%arg0: i32, %arg1: i32) -> (i32, i32) {
    %c0_i32 = arith.constant 0 : i32
    return %arg0, %arg1 : i32, i32
  }
  func.func @transform_1(%arg0: i32, %arg1: i32) -> (i32, i32) {
    %c0_i32 = arith.constant 0 : i32
    %c0_i32_0 = arith.constant 0 : i32
    return %arg1, %c0_i32 : i32, i32
  }
  func.func @transform_2(%arg0: i32, %arg1: i32) -> (i32, i32) {
    %c0_i32 = arith.constant 0 : i32
    %c0_i32_0 = arith.constant 0 : i32
    %c0_i32_1 = arith.constant 0 : i32
    return %c0_i32, %c0_i32_0 : i32, i32
  }
  func.func @transform_3(%arg0: i32, %arg1: i32) -> (i32, i32) {
    %c0_i32 = arith.constant 0 : i32
    %c0_i32_0 = arith.constant 0 : i32
    return %arg0, %c0_i32 : i32, i32
  }
}

module attributes {stable_mosaic.version = 11 : i64} {
  func.func @_linear_kernel(%arg0: i32, %arg1: i32, %arg2: memref<32x512xf32, #tpu.memory_space<vmem>>, %arg3: memref<512x32xbf16, #tpu.memory_space<vmem>>, %arg4: memref<1x32xf32, #tpu.memory_space<vmem>>, %arg5: memref<32x32xf32, #tpu.memory_space<vmem>>, %arg6: memref<32x32xf32, #tpu.memory_space<vmem>>) attributes {dimension_semantics = [#tpu.dimension_semantics<parallel>, #tpu.dimension_semantics<arbitrary>], iteration_bounds = array<i64: 1, 1>, scalar_prefetch = 0 : i64, scratch_operands = 1 : i64, tpu.core_type = #tpu.core_type<tc>, window_params = [{transform_indices = @transform_0, window_bounds = array<i64: 32, 512>}, {transform_indices = @transform_1, window_bounds = array<i64: 512, 32>}, {pipeline_mode = #tpu.pipeline_mode<synchronous>, transform_indices = @transform_2, window_bounds = array<i64: 1, 32>}, {transform_indices = @transform_3, window_bounds = array<i64: 32, 32>}]} {
    %c0_i32 = arith.constant 0 : i32
    %0 = arith.cmpi eq, %arg1, %c0_i32 : i32
    %1 = arith.extui %0 : i1 to i32
    %c0_i32_0 = arith.constant 0 : i32
    %2 = arith.cmpi ne, %1, %c0_i32_0 : i32
    scf.if %2 {
      %cst_10 = arith.constant 0.000000e+00 : f32
      %13 = vector.broadcast %cst_10 : f32 to vector<32x32xf32>
      %c0_11 = arith.constant 0 : index
      %c0_12 = arith.constant 0 : index
      %14 = vector.load %arg6[%c0_11, %c0_12] : memref<32x32xf32, #tpu.memory_space<vmem>>, vector<32x32xf32>
      tpu.vector_store %arg6[%c0_11, %c0_12], %13 {strides = array<i32>} : memref<32x32xf32, #tpu.memory_space<vmem>>, vector<32x32xf32>,
    } else {
    }
    %c0 = arith.constant 0 : index
    %c0_1 = arith.constant 0 : index
    %3 = vector.load %arg6[%c0, %c0_1] : memref<32x32xf32, #tpu.memory_space<vmem>>, vector<32x32xf32>
    %c0_2 = arith.constant 0 : index
    %c0_3 = arith.constant 0 : index
    %4 = vector.load %arg2[%c0_2, %c0_3] : memref<32x512xf32, #tpu.memory_space<vmem>>, vector<32x512xf32>
    %5 = arith.truncf %4 : vector<32x512xf32> to vector<32x512xbf16>
    %c0_4 = arith.constant 0 : index
    %c0_5 = arith.constant 0 : index
    %6 = vector.load %arg3[%c0_4, %c0_5] : memref<512x32xbf16, #tpu.memory_space<vmem>>, vector<512x32xbf16>
    %cst = arith.constant dense<0.000000e+00> : vector<32x32xf32>
    %7 = tpu.matmul %5, %6, %cst {dimension_numbers = #tpu.dot_dimension_numbers<[1], [0], [0], [1], [0, 0, 1, 1], [], []>} : vector<32x512xbf16>, vector<512x32xbf16>, vector<32x32xf32> -> vector<32x32xf32>
    %8 = arith.addf %3, %7 : vector<32x32xf32>
    %c0_6 = arith.constant 0 : index
    %c0_7 = arith.constant 0 : index
    %9 = vector.load %arg6[%c0_6, %c0_7] : memref<32x32xf32, #tpu.memory_space<vmem>>, vector<32x32xf32>
    tpu.vector_store %arg6[%c0_6, %c0_7], %8 {strides = array<i32>} : memref<32x32xf32, #tpu.memory_space<vmem>>, vector<32x32xf32>,
    %c0_i32_8 = arith.constant 0 : i32
    %10 = arith.cmpi eq, %arg1, %c0_i32_8 : i32
    %11 = arith.extui %10 : i1 to i32
    %c0_i32_9 = arith.constant 0 : i32
    %12 = arith.cmpi ne, %11, %c0_i32_9 : i32
    scf.if %12 {
      %c0_10 = arith.constant 0 : index
      %c0_11 = arith.constant 0 : index
      %13 = vector.load %arg6[%c0_10, %c0_11] : memref<32x32xf32, #tpu.memory_space<vmem>>, vector<32x32xf32>
      %c0_12 = arith.constant 0 : index
      %c0_13 = arith.constant 0 : index
      %14 = vector.load %arg4[%c0_12, %c0_13] : memref<1x32xf32, #tpu.memory_space<vmem>>, vector<1x32xf32>
      %15 = vector.broadcast %14 : vector<1x32xf32> to vector<32x32xf32>
      %16 = arith.addf %13, %15 : vector<32x32xf32>
      %cst_14 = arith.constant 0.000000e+00 : f32
      %17 = vector.broadcast %cst_14 : f32 to vector<32x32xf32>
      %18 = arith.cmpf ogt, %16, %17 : vector<32x32xf32>
      %cst_15 = arith.constant 0.00999999977 : f32
      %19 = vector.broadcast %cst_15 : f32 to vector<32x32xf32>
      %20 = arith.mulf %19, %16 : vector<32x32xf32>
      %21 = arith.select %18, %16, %20 : vector<32x32xi1>, vector<32x32xf32>
      %c0_16 = arith.constant 0 : index
      %c0_17 = arith.constant 0 : index
      %22 = vector.load %arg5[%c0_16, %c0_17] : memref<32x32xf32, #tpu.memory_space<vmem>>, vector<32x32xf32>
      tpu.vector_store %arg5[%c0_16, %c0_17], %21 {strides = array<i32>} : memref<32x32xf32, #tpu.memory_space<vmem>>, vector<32x32xf32>,
    } else {
    }
    return
  }
  func.func @transform_0(%arg0: i32, %arg1: i32) -> (i32, i32) {
    %c0_i32 = arith.constant 0 : i32
    return %arg0, %arg1 : i32, i32
  }
  func.func @transform_1(%arg0: i32, %arg1: i32) -> (i32, i32) {
    %c0_i32 = arith.constant 0 : i32
    %c0_i32_0 = arith.constant 0 : i32
    return %arg1, %c0_i32 : i32, i32
  }
  func.func @transform_2(%arg0: i32, %arg1: i32) -> (i32, i32) {
    %c0_i32 = arith.constant 0 : i32
    %c0_i32_0 = arith.constant 0 : i32
    %c0_i32_1 = arith.constant 0 : i32
    return %c0_i32, %c0_i32_0 : i32, i32
  }
  func.func @transform_3(%arg0: i32, %arg1: i32) -> (i32, i32) {
    %c0_i32 = arith.constant 0 : i32
    %c0_i32_0 = arith.constant 0 : i32
    return %arg0, %c0_i32 : i32, i32
  }
}

module attributes {stable_mosaic.version = 11 : i64} {
  func.func @_linear_kernel(%arg0: i32, %arg1: i32, %arg2: memref<2x512xf32, #tpu.memory_space<vmem>>, %arg3: memref<512x512xbf16, #tpu.memory_space<vmem>>, %arg4: memref<1x512xf32, #tpu.memory_space<vmem>>, %arg5: memref<2x512xf32, #tpu.memory_space<vmem>>, %arg6: memref<2x512xf32, #tpu.memory_space<vmem>>) attributes {dimension_semantics = [#tpu.dimension_semantics<parallel>, #tpu.dimension_semantics<arbitrary>], iteration_bounds = array<i64: 1, 1>, scalar_prefetch = 0 : i64, scratch_operands = 1 : i64, tpu.core_type = #tpu.core_type<tc>, window_params = [{transform_indices = @transform_0, window_bounds = array<i64: 2, 512>}, {transform_indices = @transform_1, window_bounds = array<i64: 512, 512>}, {pipeline_mode = #tpu.pipeline_mode<synchronous>, transform_indices = @transform_2, window_bounds = array<i64: 1, 512>}, {transform_indices = @transform_3, window_bounds = array<i64: 2, 512>}]} {
    %c0_i32 = arith.constant 0 : i32
    %0 = arith.cmpi eq, %arg1, %c0_i32 : i32
    %1 = arith.extui %0 : i1 to i32
    %c0_i32_0 = arith.constant 0 : i32
    %2 = arith.cmpi ne, %1, %c0_i32_0 : i32
    scf.if %2 {
      %cst_10 = arith.constant 0.000000e+00 : f32
      %13 = vector.broadcast %cst_10 : f32 to vector<2x512xf32>
      %c0_11 = arith.constant 0 : index
      %c0_12 = arith.constant 0 : index
      %14 = vector.load %arg6[%c0_11, %c0_12] : memref<2x512xf32, #tpu.memory_space<vmem>>, vector<2x512xf32>
      tpu.vector_store %arg6[%c0_11, %c0_12], %13 {strides = array<i32>} : memref<2x512xf32, #tpu.memory_space<vmem>>, vector<2x512xf32>,
    } else {
    }
    %c0 = arith.constant 0 : index
    %c0_1 = arith.constant 0 : index
    %3 = vector.load %arg6[%c0, %c0_1] : memref<2x512xf32, #tpu.memory_space<vmem>>, vector<2x512xf32>
    %c0_2 = arith.constant 0 : index
    %c0_3 = arith.constant 0 : index
    %4 = vector.load %arg2[%c0_2, %c0_3] : memref<2x512xf32, #tpu.memory_space<vmem>>, vector<2x512xf32>
    %5 = arith.truncf %4 : vector<2x512xf32> to vector<2x512xbf16>
    %c0_4 = arith.constant 0 : index
    %c0_5 = arith.constant 0 : index
    %6 = vector.load %arg3[%c0_4, %c0_5] : memref<512x512xbf16, #tpu.memory_space<vmem>>, vector<512x512xbf16>
    %cst = arith.constant dense<0.000000e+00> : vector<2x512xf32>
    %7 = tpu.matmul %5, %6, %cst {dimension_numbers = #tpu.dot_dimension_numbers<[1], [0], [0], [1], [0, 0, 1, 1], [], []>} : vector<2x512xbf16>, vector<512x512xbf16>, vector<2x512xf32> -> vector<2x512xf32>
    %8 = arith.addf %3, %7 : vector<2x512xf32>
    %c0_6 = arith.constant 0 : index
    %c0_7 = arith.constant 0 : index
    %9 = vector.load %arg6[%c0_6, %c0_7] : memref<2x512xf32, #tpu.memory_space<vmem>>, vector<2x512xf32>
    tpu.vector_store %arg6[%c0_6, %c0_7], %8 {strides = array<i32>} : memref<2x512xf32, #tpu.memory_space<vmem>>, vector<2x512xf32>,
    %c0_i32_8 = arith.constant 0 : i32
    %10 = arith.cmpi eq, %arg1, %c0_i32_8 : i32
    %11 = arith.extui %10 : i1 to i32
    %c0_i32_9 = arith.constant 0 : i32
    %12 = arith.cmpi ne, %11, %c0_i32_9 : i32
    scf.if %12 {
      %c0_10 = arith.constant 0 : index
      %c0_11 = arith.constant 0 : index
      %13 = vector.load %arg6[%c0_10, %c0_11] : memref<2x512xf32, #tpu.memory_space<vmem>>, vector<2x512xf32>
      %c0_12 = arith.constant 0 : index
      %c0_13 = arith.constant 0 : index
      %14 = vector.load %arg4[%c0_12, %c0_13] : memref<1x512xf32, #tpu.memory_space<vmem>>, vector<1x512xf32>
      %15 = vector.broadcast %14 : vector<1x512xf32> to vector<2x512xf32>
      %16 = arith.addf %13, %15 : vector<2x512xf32>
      %cst_14 = arith.constant 0.000000e+00 : f32
      %17 = vector.broadcast %cst_14 : f32 to vector<2x512xf32>
      %18 = arith.cmpf ogt, %16, %17 : vector<2x512xf32>
      %cst_15 = arith.constant 0.00999999977 : f32
      %19 = vector.broadcast %cst_15 : f32 to vector<2x512xf32>
      %20 = arith.mulf %19, %16 : vector<2x512xf32>
      %21 = arith.select %18, %16, %20 : vector<2x512xi1>, vector<2x512xf32>
      %c0_16 = arith.constant 0 : index
      %c0_17 = arith.constant 0 : index
      %22 = vector.load %arg5[%c0_16, %c0_17] : memref<2x512xf32, #tpu.memory_space<vmem>>, vector<2x512xf32>
      tpu.vector_store %arg5[%c0_16, %c0_17], %21 {strides = array<i32>} : memref<2x512xf32, #tpu.memory_space<vmem>>, vector<2x512xf32>,
    } else {
    }
    return
  }
  func.func @transform_0(%arg0: i32, %arg1: i32) -> (i32, i32) {
    %c0_i32 = arith.constant 0 : i32
    return %arg0, %arg1 : i32, i32
  }
  func.func @transform_1(%arg0: i32, %arg1: i32) -> (i32, i32) {
    %c0_i32 = arith.constant 0 : i32
    %c0_i32_0 = arith.constant 0 : i32
    return %arg1, %c0_i32 : i32, i32
  }
  func.func @transform_2(%arg0: i32, %arg1: i32) -> (i32, i32) {
    %c0_i32 = arith.constant 0 : i32
    %c0_i32_0 = arith.constant 0 : i32
    %c0_i32_1 = arith.constant 0 : i32
    return %c0_i32, %c0_i32_0 : i32, i32
  }
  func.func @transform_3(%arg0: i32, %arg1: i32) -> (i32, i32) {
    %c0_i32 = arith.constant 0 : i32
    %c0_i32_0 = arith.constant 0 : i32
    return %arg0, %c0_i32 : i32, i32
  }
}

module attributes {stable_mosaic.version = 11 : i64} {
  func.func @_tail_kernel(%arg0: memref<2x512xf32, #tpu.memory_space<vmem>>, %arg1: memref<2x4xf32, #tpu.memory_space<vmem>>, %arg2: memref<2x4xf32, #tpu.memory_space<vmem>>, %arg3: memref<512x256xbf16, #tpu.memory_space<vmem>>, %arg4: memref<1x256xf32, #tpu.memory_space<vmem>>, %arg5: memref<4x12xf32, #tpu.memory_space<vmem>>, %arg6: memref<1x12xf32, #tpu.memory_space<vmem>>, %arg7: memref<4x32xf32, #tpu.memory_space<vmem>>, %arg8: memref<1x32xf32, #tpu.memory_space<vmem>>, %arg9: memref<1x256xf32, #tpu.memory_space<vmem>>, %arg10: memref<1x12xf32, #tpu.memory_space<vmem>>, %arg11: memref<1x32xf32, #tpu.memory_space<vmem>>, %arg12: memref<1x1xf32, #tpu.memory_space<vmem>>, %arg13: memref<2x1xf32, #tpu.memory_space<vmem>>) attributes {dimension_semantics = [], scalar_prefetch = 0 : i64, scratch_operands = 0 : i64, tpu.core_type = #tpu.core_type<tc>} {
    %c0 = arith.constant 0 : index
    %c0_0 = arith.constant 0 : index
    %0 = vector.load %arg0[%c0, %c0_0] : memref<2x512xf32, #tpu.memory_space<vmem>>, vector<2x512xf32>
    %1 = arith.truncf %0 : vector<2x512xf32> to vector<2x512xbf16>
    %c0_1 = arith.constant 0 : index
    %c0_2 = arith.constant 0 : index
    %2 = vector.load %arg3[%c0_1, %c0_2] : memref<512x256xbf16, #tpu.memory_space<vmem>>, vector<512x256xbf16>
    %cst = arith.constant dense<0.000000e+00> : vector<2x256xf32>
    %3 = tpu.matmul %1, %2, %cst {dimension_numbers = #tpu.dot_dimension_numbers<[1], [0], [0], [1], [0, 0, 1, 1], [], []>} : vector<2x512xbf16>, vector<512x256xbf16>, vector<2x256xf32> -> vector<2x256xf32>
    %c0_3 = arith.constant 0 : index
    %c0_4 = arith.constant 0 : index
    %4 = vector.load %arg4[%c0_3, %c0_4] : memref<1x256xf32, #tpu.memory_space<vmem>>, vector<1x256xf32>
    %5 = vector.broadcast %4 : vector<1x256xf32> to vector<2x256xf32>
    %6 = arith.addf %3, %5 : vector<2x256xf32>
    %cst_5 = arith.constant 0.000000e+00 : f32
    %7 = vector.broadcast %cst_5 : f32 to vector<2x256xf32>
    %8 = arith.cmpf ogt, %6, %7 : vector<2x256xf32>
    %cst_6 = arith.constant 0.00999999977 : f32
    %9 = vector.broadcast %cst_6 : f32 to vector<2x256xf32>
    %10 = arith.mulf %9, %6 : vector<2x256xf32>
    %11 = arith.select %8, %6, %10 : vector<2x256xi1>, vector<2x256xf32>
    %c0_7 = arith.constant 0 : index
    %c0_8 = arith.constant 0 : index
    %12 = vector.load %arg1[%c0_7, %c0_8] : memref<2x4xf32, #tpu.memory_space<vmem>>, vector<2x4xf32>
    %c0_9 = arith.constant 0 : index
    %c0_10 = arith.constant 0 : index
    %13 = vector.load %arg5[%c0_9, %c0_10] : memref<4x12xf32, #tpu.memory_space<vmem>>, vector<4x12xf32>
    %cst_11 = arith.constant dense<0.000000e+00> : vector<2x12xf32>
    %14 = tpu.matmul %12, %13, %cst_11 {dimension_numbers = #tpu.dot_dimension_numbers<[1], [0], [0], [1], [0, 0, 1, 1], [], []>} : vector<2x4xf32>, vector<4x12xf32>, vector<2x12xf32> -> vector<2x12xf32>
    %c0_12 = arith.constant 0 : index
    %c0_13 = arith.constant 0 : index
    %15 = vector.load %arg6[%c0_12, %c0_13] : memref<1x12xf32, #tpu.memory_space<vmem>>, vector<1x12xf32>
    %16 = vector.broadcast %15 : vector<1x12xf32> to vector<2x12xf32>
    %17 = arith.addf %14, %16 : vector<2x12xf32>
    %cst_14 = arith.constant 0.000000e+00 : f32
    %18 = vector.broadcast %cst_14 : f32 to vector<2x12xf32>
    %19 = arith.cmpf ogt, %17, %18 : vector<2x12xf32>
    %cst_15 = arith.constant 0.00999999977 : f32
    %20 = vector.broadcast %cst_15 : f32 to vector<2x12xf32>
    %21 = arith.mulf %20, %17 : vector<2x12xf32>
    %22 = arith.select %19, %17, %21 : vector<2x12xi1>, vector<2x12xf32>
    %c0_16 = arith.constant 0 : index
    %c0_17 = arith.constant 0 : index
    %23 = vector.load %arg2[%c0_16, %c0_17] : memref<2x4xf32, #tpu.memory_space<vmem>>, vector<2x4xf32>
    %c0_18 = arith.constant 0 : index
    %c0_19 = arith.constant 0 : index
    %24 = vector.load %arg7[%c0_18, %c0_19] : memref<4x32xf32, #tpu.memory_space<vmem>>, vector<4x32xf32>
    %cst_20 = arith.constant dense<0.000000e+00> : vector<2x32xf32>
    %25 = tpu.matmul %23, %24, %cst_20 {dimension_numbers = #tpu.dot_dimension_numbers<[1], [0], [0], [1], [0, 0, 1, 1], [], []>} : vector<2x4xf32>, vector<4x32xf32>, vector<2x32xf32> -> vector<2x32xf32>
    %c0_21 = arith.constant 0 : index
    %c0_22 = arith.constant 0 : index
    %26 = vector.load %arg8[%c0_21, %c0_22] : memref<1x32xf32, #tpu.memory_space<vmem>>, vector<1x32xf32>
    %27 = vector.broadcast %26 : vector<1x32xf32> to vector<2x32xf32>
    %28 = arith.addf %25, %27 : vector<2x32xf32>
    %cst_23 = arith.constant 0.000000e+00 : f32
    %29 = vector.broadcast %cst_23 : f32 to vector<2x32xf32>
    %30 = arith.cmpf ogt, %28, %29 : vector<2x32xf32>
    %cst_24 = arith.constant 0.00999999977 : f32
    %31 = vector.broadcast %cst_24 : f32 to vector<2x32xf32>
    %32 = arith.mulf %31, %28 : vector<2x32xf32>
    %33 = arith.select %30, %28, %32 : vector<2x32xi1>, vector<2x32xf32>
    %c0_25 = arith.constant 0 : index
    %c0_26 = arith.constant 0 : index
    %34 = vector.load %arg9[%c0_25, %c0_26] : memref<1x256xf32, #tpu.memory_space<vmem>>, vector<1x256xf32>
    %35 = vector.broadcast %34 : vector<1x256xf32> to vector<2x256xf32>
    %36 = arith.mulf %11, %35 : vector<2x256xf32>
    %cst_27 = arith.constant dense<0.000000e+00> : vector<2xf32>
    %37 = vector.multi_reduction <add>, %36, %cst_27 [1] : vector<2x256xf32> to vector<2xf32>
    %38 = vector.shape_cast %37 : vector<2xf32> to vector<2x1xf32>
    %c0_28 = arith.constant 0 : index
    %c0_29 = arith.constant 0 : index
    %39 = vector.load %arg10[%c0_28, %c0_29] : memref<1x12xf32, #tpu.memory_space<vmem>>, vector<1x12xf32>
    %40 = vector.broadcast %39 : vector<1x12xf32> to vector<2x12xf32>
    %41 = arith.mulf %22, %40 : vector<2x12xf32>
    %cst_30 = arith.constant dense<0.000000e+00> : vector<2xf32>
    %42 = vector.multi_reduction <add>, %41, %cst_30 [1] : vector<2x12xf32> to vector<2xf32>
    %43 = vector.shape_cast %42 : vector<2xf32> to vector<2x1xf32>
    %44 = arith.addf %38, %43 : vector<2x1xf32>
    %c0_31 = arith.constant 0 : index
    %c0_32 = arith.constant 0 : index
    %45 = vector.load %arg11[%c0_31, %c0_32] : memref<1x32xf32, #tpu.memory_space<vmem>>, vector<1x32xf32>
    %46 = vector.broadcast %45 : vector<1x32xf32> to vector<2x32xf32>
    %47 = arith.mulf %33, %46 : vector<2x32xf32>
    %cst_33 = arith.constant dense<0.000000e+00> : vector<2xf32>
    %48 = vector.multi_reduction <add>, %47, %cst_33 [1] : vector<2x32xf32> to vector<2xf32>
    %49 = vector.shape_cast %48 : vector<2xf32> to vector<2x1xf32>
    %50 = arith.addf %44, %49 : vector<2x1xf32>
    %c0_34 = arith.constant 0 : index
    %c0_35 = arith.constant 0 : index
    %51 = vector.load %arg12[%c0_34, %c0_35] : memref<1x1xf32, #tpu.memory_space<vmem>>, vector<1x1xf32>
    %52 = vector.broadcast %51 : vector<1x1xf32> to vector<2x1xf32>
    %53 = arith.addf %50, %52 : vector<2x1xf32>
    %c0_36 = arith.constant 0 : index
    %c0_37 = arith.constant 0 : index
    %54 = vector.load %arg13[%c0_36, %c0_37] : memref<2x1xf32, #tpu.memory_space<vmem>>, vector<2x1xf32>
    tpu.vector_store %arg13[%c0_36, %c0_37], %53 {strides = array<i32>} : memref<2x1xf32, #tpu.memory_space<vmem>>, vector<2x1xf32>,
    return
  }
}

</mosaic_0001>

<bundles_post_ra>
// kernel: critic_forward.4
= control target key start
LH: loop header
LB: loop body
LE: loop exit
PB: predicated region body
PF: predicated region fallthrough
CT: control target
= control target key end

     0   :  { %vm19_vm0 = vcmask 130048   ;;  %v802_v1 = vmov 0.0   ;;  %s1228_s1 = inlined_call_operand.vmem [shape: bf16[128,16], index: 1, kind: input, shape index: {}]   ;;  %s1229_s0 = inlined_call_operand.vmem [shape: f32[288,128], index: 0, kind: input, shape index: {}]   ;;  %s1230_s2 = inlined_call_operand.vmem [shape: f32[1,16], index: 2, kind: input, shape index: {}]   ;;  %s1231_s3 = inlined_call_operand.vmem [shape: f32[288,16], index: 3, kind: output, shape index: {}]  }
   0x1   :  { %v794_v0 = vld [vmem:[%s1228_s1 + $0x38] sm:$0xff]   ;;  %22 = vst.msk [vmem:[#allocation2 + $0x10] sm:$0xff] %vm19_vm0, %v802_v1  ;;  %20 = vst.msk [vmem:[#allocation2] sm:$0xff] %vm19_vm0, %v802_v1  ;;  %v795_v2 = vld [vmem:[%s1228_s1 + $0x30] sm:$0xff]  }
   0x2   :  { %21 = vst.msk [vmem:[#allocation2 + $0x8] sm:$0xff] %vm19_vm0, %v802_v1  ;;  %23 = vst.msk [vmem:[#allocation2 + $0x18] sm:$0xff] %vm19_vm0, %v802_v1  ;;  %725 = vmatprep.subr.bf16.mxu0 %v794_v0  ;;  %777 = vmatprep.subr.bf16.mxu1 %v794_v0  ;;  %v796_v3 = vld [vmem:[%s1228_s1 + $0x28] sm:$0xff]   ;;  %v797_v4 = vld [vmem:[%s1228_s1 + $0x20] sm:$0xff]  }
   0x3   :  { %24 = vst.msk [vmem:[#allocation2 + $0x20] sm:$0xff] %vm19_vm0, %v802_v1  ;;  %25 = vst.msk [vmem:[#allocation2 + $0x28] sm:$0xff] %vm19_vm0, %v802_v1  ;;  %726 = vmatpush3.bf16.msra.mxu0 %v794_v0  ;;  %785 = vmatpush3.bf16.msra.mxu1 %v794_v0  ;;  %v92_v5 = vld [vmem:[%s1229_s0] sm:$0xff]  ;;  %v93_v6 = vld [vmem:[%s1229_s0 + $0x8] sm:$0xff] }
   0x4   :  { %26 = vst.msk [vmem:[#allocation2 + $0x30] sm:$0xff] %vm19_vm0, %v802_v1  ;;  %27 = vst.msk [vmem:[#allocation2 + $0x38] sm:$0xff] %vm19_vm0, %v802_v1  ;;  %727 = vmatprep.subr.bf16.mxu0 %v795_v2  ;;  %778 = vmatprep.subr.bf16.mxu1 %v795_v2  ;;  %v112_v7 = vld [vmem:[%s1229_s0 + $0xa0] sm:$0xff]  ;;  %v128_v8 = vpack.c.bf16 %v93_v6, %v92_v5  ;;  %v113_v9 = vld [vmem:[%s1229_s0 + $0xa8] sm:$0xff] }
   0x5   :  { %28 = vst.msk [vmem:[#allocation2 + $0x40] sm:$0xff] %vm19_vm0, %v802_v1  ;;  %29 = vst.msk [vmem:[#allocation2 + $0x48] sm:$0xff] %vm19_vm0, %v802_v1  ;;  %v138_v10 = vpack.c.bf16 %v113_v9, %v112_v7  ;;  %v798_v11 = vld [vmem:[%s1228_s1 + $0x18] sm:$0xff]   ;;  %v799_v12 = vld [vmem:[%s1228_s1 + $0x10] sm:$0xff]  }
   0x6   :  { %30 = vst.msk [vmem:[#allocation2 + $0x50] sm:$0xff] %vm19_vm0, %v802_v1  ;;  %31 = vst.msk [vmem:[#allocation2 + $0x58] sm:$0xff] %vm19_vm0, %v802_v1  ;;  %741 = vmatprep.mubr.bf16.mxu0 %v128_v8  ;;  %v800_v13 = vld [vmem:[%s1228_s1 + $0x8] sm:$0xff]   ;;  %v801_v14 = vld [vmem:[%s1228_s1] sm:$0xff]  }
   0x7   :  { %32 = vst.msk [vmem:[#allocation2 + $0x60] sm:$0xff] %vm19_vm0, %v802_v1  ;;  %33 = vst.msk [vmem:[#allocation2 + $0x68] sm:$0xff] %vm19_vm0, %v802_v1  ;;  %728 = vmatpush3.bf16.msra.mxu0 %v795_v2  ;;  %786 = vmatpush3.bf16.msra.mxu1 %v795_v2  ;;  %v94_v15 = vld [vmem:[%s1229_s0 + $0x10] sm:$0xff]  ;;  %v95_v16 = vld [vmem:[%s1229_s0 + $0x18] sm:$0xff] }
   0x8   :  { %34 = vst.msk [vmem:[#allocation2 + $0x70] sm:$0xff] %vm19_vm0, %v802_v1  ;;  %35 = vst.msk [vmem:[#allocation2 + $0x78] sm:$0xff] %vm19_vm0, %v802_v1  ;;  %729 = vmatprep.subr.bf16.mxu0 %v796_v3  ;;  %779 = vmatprep.subr.bf16.mxu1 %v796_v3  ;;  %v114_v17 = vld [vmem:[%s1229_s0 + $0xb0] sm:$0xff]  ;;  %v115_v18 = vld [vmem:[%s1229_s0 + $0xb8] sm:$0xff]  ;;  %v129_v23 = vpack.c.bf16 %v95_v16, %v94_v15 }
   0x9   :  { %36 = vst.msk [vmem:[#allocation2 + $0x80] sm:$0xff] %vm19_vm0, %v802_v1  ;;  %37 = vst.msk [vmem:[#allocation2 + $0x88] sm:$0xff] %vm19_vm0, %v802_v1  ;;  %761 = vmatprep.mubr.bf16.mxu1 %v138_v10  ;;  %v96_v19 = vld [vmem:[%s1229_s0 + $0x20] sm:$0xff]  ;;  %v97_v20 = vld [vmem:[%s1229_s0 + $0x28] sm:$0xff]  ;;  %v139_v24 = vpack.c.bf16 %v115_v18, %v114_v17 }
   0xa   :  { %38 = vst.msk [vmem:[#allocation2 + $0x90] sm:$0xff] %vm19_vm0, %v802_v1  ;;  %39 = vst.msk [vmem:[#allocation2 + $0x98] sm:$0xff] %vm19_vm0, %v802_v1  ;;  %v116_v21 = vld [vmem:[%s1229_s0 + $0xc0] sm:$0xff]  ;;  %v117_v22 = vld [vmem:[%s1229_s0 + $0xc8] sm:$0xff]  ;;  %v130_v25 = vpack.c.bf16 %v97_v20, %v96_v19 }
   0xb   :  { %40 = vst.msk [vmem:[#allocation2 + $0xa0] sm:$0xff] %vm19_vm0, %v802_v1  ;;  %41 = vst.msk [vmem:[#allocation2 + $0xa8] sm:$0xff] %vm19_vm0, %v802_v1  ;;  %730 = vmatpush3.bf16.msra.mxu0 %v796_v3  ;;  %787 = vmatpush3.bf16.msra.mxu1 %v796_v3  ;;  %v140_v26 = vpack.c.bf16 %v117_v22, %v116_v21  ;;  %v98_v27 = vld [vmem:[%s1229_s0 + $0x30] sm:$0xff]  ;;  %v99_v28 = vld [vmem:[%s1229_s0 + $0x38] sm:$0xff] }
   0xc   :  { %42 = vst.msk [vmem:[#allocation2 + $0xb0] sm:$0xff] %vm19_vm0, %v802_v1  ;;  %43 = vst.msk [vmem:[#allocation2 + $0xb8] sm:$0xff] %vm19_vm0, %v802_v1  ;;  %731 = vmatprep.subr.bf16.mxu0 %v797_v4  ;;  %780 = vmatprep.subr.bf16.mxu1 %v797_v4  ;;  %v118_v29 = vld [vmem:[%s1229_s0 + $0xd0] sm:$0xff]  ;;  %v119_v30 = vld [vmem:[%s1229_s0 + $0xd8] sm:$0xff]  ;;  %v131_v35 = vpack.c.bf16 %v99_v28, %v98_v27 }
   0xd   :  { %44 = vst.msk [vmem:[#allocation2 + $0xc0] sm:$0xff] %vm19_vm0, %v802_v1  ;;  %45 = vst.msk [vmem:[#allocation2 + $0xc8] sm:$0xff] %vm19_vm0, %v802_v1  ;;  %v100_v31 = vld [vmem:[%s1229_s0 + $0x40] sm:$0xff]  ;;  %v101_v32 = vld [vmem:[%s1229_s0 + $0x48] sm:$0xff]  ;;  %v141_v36 = vpack.c.bf16 %v119_v30, %v118_v29 }
   0xe   :  { %46 = vst.msk [vmem:[#allocation2 + $0xd0] sm:$0xff] %vm19_vm0, %v802_v1  ;;  %47 = vst.msk [vmem:[#allocation2 + $0xd8] sm:$0xff] %vm19_vm0, %v802_v1  ;;  %v120_v33 = vld [vmem:[%s1229_s0 + $0xe0] sm:$0xff]  ;;  %v121_v34 = vld [vmem:[%s1229_s0 + $0xe8] sm:$0xff]  ;;  %v132_v37 = vpack.c.bf16 %v101_v32, %v100_v31 }
   0xf   :  { %48 = vst.msk [vmem:[#allocation2 + $0xe0] sm:$0xff] %vm19_vm0, %v802_v1  ;;  %49 = vst.msk [vmem:[#allocation2 + $0xe8] sm:$0xff] %vm19_vm0, %v802_v1  ;;  %732 = vmatpush3.bf16.msra.mxu0 %v797_v4  ;;  %788 = vmatpush3.bf16.msra.mxu1 %v797_v4  ;;  %v142_v38 = vpack.c.bf16 %v121_v34, %v120_v33  ;;  %v102_v39 = vld [vmem:[%s1229_s0 + $0x50] sm:$0xff]  ;;  %v103_v40 = vld [vmem:[%s1229_s0 + $0x58] sm:$0xff] }
  0x10   :  { %50 = vst.msk [vmem:[#allocation2 + $0xf0] sm:$0xff] %vm19_vm0, %v802_v1  ;;  %51 = vst.msk [vmem:[#allocation2 + $0xf8] sm:$0xff] %vm19_vm0, %v802_v1  ;;  %733 = vmatprep.subr.bf16.mxu0 %v798_v11  ;;  %781 = vmatprep.subr.bf16.mxu1 %v798_v11  ;;  %v122_v41 = vld [vmem:[%s1229_s0 + $0xf0] sm:$0xff]  ;;  %v123_v42 = vld [vmem:[%s1229_s0 + $0xf8] sm:$0xff]  ;;  %v133_v47 = vpack.c.bf16 %v103_v40, %v102_v39 }
  0x11   :  { %52 = vst.msk [vmem:[#allocation2 + $0x100] sm:$0xff] %vm19_vm0, %v802_v1  ;;  %53 = vst.msk [vmem:[#allocation2 + $0x108] sm:$0xff] %vm19_vm0, %v802_v1  ;;  %v104_v43 = vld [vmem:[%s1229_s0 + $0x60] sm:$0xff]  ;;  %v105_v44 = vld [vmem:[%s1229_s0 + $0x68] sm:$0xff]  ;;  %v143_v48 = vpack.c.bf16 %v123_v42, %v122_v41 }
  0x12   :  { %54 = vst.msk [vmem:[#allocation2 + $0x110] sm:$0xff] %vm19_vm0, %v802_v1  ;;  %55 = vst.msk [vmem:[#allocation2 + $0x118] sm:$0xff] %vm19_vm0, %v802_v1  ;;  %v124_v45 = vld [vmem:[%s1229_s0 + $0x100] sm:$0xff]  ;;  %v125_v46 = vld [vmem:[%s1229_s0 + $0x108] sm:$0xff]  ;;  %v134_v49 = vpack.c.bf16 %v105_v44, %v104_v43 }
  0x13   :  { %734 = vmatpush3.bf16.msra.mxu0 %v798_v11  ;;  %789 = vmatpush3.bf16.msra.mxu1 %v798_v11  ;;  %v144_v50 = vpack.c.bf16 %v125_v46, %v124_v45  ;;  %v106_v51 = vld [vmem:[%s1229_s0 + $0x70] sm:$0xff]  ;;  %v107_v52 = vld [vmem:[%s1229_s0 + $0x78] sm:$0xff]  ;;  %v108_v55 = vld [vmem:[%s1229_s0 + $0x80] sm:$0xff] }
  0x14   :  { %735 = vmatprep.subr.bf16.mxu0 %v799_v12  ;;  %782 = vmatprep.subr.bf16.mxu1 %v799_v12  ;;  %v126_v53 = vld [vmem:[%s1229_s0 + $0x110] sm:$0xff]  ;;  %v127_v54 = vld [vmem:[%s1229_s0 + $0x118] sm:$0xff]  ;;  %v109_v56 = vld [vmem:[%s1229_s0 + $0x88] sm:$0xff]  ;;  %v135_v57 = vpack.c.bf16 %v107_v52, %v106_v51 }
  0x15   :  { %v145_v58 = vpack.c.bf16 %v127_v54, %v126_v53  ;;  %v136_v59 = vpack.c.bf16 %v109_v56, %v108_v55  ;;  %v110_v60 = vld [vmem:[%s1229_s0 + $0x90] sm:$0xff]  ;;  %v111_v61 = vld [vmem:[%s1229_s0 + $0x98] sm:$0xff]  ;;  %v56_v3 = vld [vmem:[#allocation2] sm:$0xff] }
  0x16   :  { %v137_v62 = vpack.c.bf16 %v111_v61, %v110_v60  ;;  %v58_v63 = vld [vmem:[#allocation2 + $0x10] sm:$0xff]  ;;  %v76_v4 = vld [vmem:[#allocation2 + $0xa0] sm:$0xff]  ;;  %v59_v9 = vld [vmem:[#allocation2 + $0x18] sm:$0xff] }
  0x17   :  { %736 = vmatpush3.bf16.msra.mxu0 %v799_v12  ;;  %790 = vmatpush3.bf16.msra.mxu1 %v799_v12  ;;  %v78_v0 = vld [vmem:[#allocation2 + $0xb0] sm:$0xff]  ;;  %v79_v10 = vld [vmem:[#allocation2 + $0xb8] sm:$0xff]  ;;  %v57_v15 = vld [vmem:[#allocation2 + $0x8] sm:$0xff] }
  0x18   :  { %737 = vmatprep.subr.bf16.mxu0 %v800_v13  ;;  %783 = vmatprep.subr.bf16.mxu1 %v800_v13  ;;  %v77_v16 = vld [vmem:[#allocation2 + $0xa8] sm:$0xff]  ;;  %v62_v21 = vld [vmem:[#allocation2 + $0x30] sm:$0xff]  ;;  %v60_v28 = vld [vmem:[#allocation2 + $0x20] sm:$0xff] }
  0x19   :  { %v82_v22 = vld [vmem:[#allocation2 + $0xd0] sm:$0xff]  ;;  %v80_v29 = vld [vmem:[#allocation2 + $0xc0] sm:$0xff]  ;;  %v63_v40 = vld [vmem:[#allocation2 + $0x38] sm:$0xff] }
  0x1a   :  { %v83_v41 = vld [vmem:[#allocation2 + $0xd8] sm:$0xff]  ;;  %v61_v54 = vld [vmem:[#allocation2 + $0x28] sm:$0xff] }
  0x1b   :  { %738 = vmatpush3.bf16.msra.mxu0 %v800_v13  ;;  %791 = vmatpush3.bf16.msra.mxu1 %v800_v13  ;;  %v81_v61 = vld [vmem:[#allocation2 + $0xc8] sm:$0xff] }
  0x1c   :  { %739 = vmatprep.subr.bf16.mxu0 %v801_v14  ;;  %784 = vmatprep.subr.bf16.mxu1 %v801_v14 }
  0x1f   :  { %740 = vmatpush3.bf16.msra.mxu0 %v801_v14  ;;  %792 = vmatpush3.bf16.msra.mxu1 %v801_v14 }
  0x22   :  { %742 = vmatmul.mubr.bf16.vlgmr.msra.gmra.mxu0 %v129_v23  ;;  %762 = vmatmul.mubr.bf16.vlgmr.msra.gmra.mxu1 %v139_v24 }
  0x23   :  { %745 = vmatprep.mubr.bf16.mxu0 %v130_v25  ;;  %765 = vmatprep.mubr.bf16.mxu1 %v140_v26  ;;  %v1000_v25 = vld [vmem:[%s1230_s2] ss:$0 sm:$0xff] }
  0x2a   :  { %746 = vmatmul.mubr.bf16.gmra.mxu0 %v131_v35  ;;  %766 = vmatmul.mubr.bf16.gmra.mxu1 %v141_v36 }
  0x2b   :  { %749 = vmatprep.mubr.bf16.mxu0 %v132_v37  ;;  %769 = vmatprep.mubr.bf16.mxu1 %v142_v38 }
  0x32   :  { %750 = vmatmul.mubr.bf16.gmra.mxu0 %v133_v47  ;;  %770 = vmatmul.mubr.bf16.gmra.mxu1 %v143_v48 }
  0x33   :  { %753 = vmatprep.mubr.bf16.mxu0 %v134_v49  ;;  %773 = vmatprep.mubr.bf16.mxu1 %v144_v50 }
  0x3a   :  { %754 = vmatmul.mubr.bf16.gmra.mxu0 %v135_v57  ;;  %774 = vmatmul.mubr.bf16.gmra.mxu1 %v145_v58 }
  0x3b   :  { %757 = vmatprep.mubr.bf16.mxu0 %v136_v59 }
  0x42   :  { %758 = vmatmul.mubr.bf16.gmra.mxu0 %v137_v62  ;;  %v66_v62 = vld [vmem:[#allocation2 + $0x50] sm:$0xff] }
  0xe2   :  { %v743_v1 = vpop.f32.mrf.mxu0  ;;  %v763_v2 = vpop.f32.mrf.mxu1 }
  0xe3   :  { %v389_v5 = vadd.f32 %v743_v1, %v58_v63  ;;  %v409_v6 = vadd.f32 %v763_v2, %v78_v0  ;;  %v86_v63 = vld [vmem:[#allocation2 + $0xf0] sm:$0xff] }
  0xe4   :  { %v244_v7 = vpop.f32.mrf.mxu0  ;;  %v324_v8 = vpop.f32.mrf.mxu1 }
  0xe5   :  { %426 = vst.msk [vmem:[#allocation2 + $0x10] sm:$0xff] %vm19_vm0, %v389_v5  ;;  %446 = vst.msk [vmem:[#allocation2 + $0xb0] sm:$0xff] %vm19_vm0, %v409_v6  ;;  %v387_v11 = vadd.f32 %v244_v7, %v56_v3  ;;  %v407_v12 = vadd.f32 %v324_v8, %v76_v4 }
  0xe6   :  { %v744_v13 = vpop.f32.mrf.mxu0  ;;  %v764_v14 = vpop.f32.mrf.mxu1 }
  0xe7   :  { %424 = vst.msk [vmem:[#allocation2] sm:$0xff] %vm19_vm0, %v387_v11  ;;  %444 = vst.msk [vmem:[#allocation2 + $0xa0] sm:$0xff] %vm19_vm0, %v407_v12  ;;  %v390_v17 = vadd.f32 %v744_v13, %v59_v9  ;;  %v410_v18 = vadd.f32 %v764_v14, %v79_v10 }
  0xe8   :  { %v247_v19 = vpop.f32.mrf.mxu0  ;;  %v327_v20 = vpop.f32.mrf.mxu1 }
  0xe9   :  { %427 = vst.msk [vmem:[#allocation2 + $0x18] sm:$0xff] %vm19_vm0, %v390_v17  ;;  %447 = vst.msk [vmem:[#allocation2 + $0xb8] sm:$0xff] %vm19_vm0, %v410_v18  ;;  %v388_v23 = vadd.f32 %v247_v19, %v57_v15  ;;  %v408_v24 = vadd.f32 %v327_v20, %v77_v16 }
  0xea   :  { %v747_v26 = vpop.f32.mrf.mxu0  ;;  %v767_v27 = vpop.f32.mrf.mxu1 }
  0xeb   :  { %425 = vst.msk [vmem:[#allocation2 + $0x8] sm:$0xff] %vm19_vm0, %v388_v23  ;;  %445 = vst.msk [vmem:[#allocation2 + $0xa8] sm:$0xff] %vm19_vm0, %v408_v24  ;;  %v393_v30 = vadd.f32 %v747_v26, %v62_v21  ;;  %v413_v31 = vadd.f32 %v767_v27, %v82_v22 }
  0xec   :  { %v465_v32 = vld [vmem:[#allocation2 + $0x10] sm:$0xff]  ;;  %v260_v34 = vpop.f32.mrf.mxu0  ;;  %v340_v35 = vpop.f32.mrf.mxu1 }
  0xed   :  { %v485_v33 = vld [vmem:[#allocation2 + $0xb0] sm:$0xff]  ;;  %v508_v36 = vadd.f32 %v1000_v25, %v465_v32  ;;  %430 = vst.msk [vmem:[#allocation2 + $0x30] sm:$0xff] %vm19_vm0, %v393_v30  ;;  %450 = vst.msk [vmem:[#allocation2 + $0xd0] sm:$0xff] %vm19_vm0, %v413_v31  ;;  %v391_v38 = vadd.f32 %v260_v34, %v60_v28  ;;  %v411_v39 = vadd.f32 %v340_v35, %v80_v29 }
  0xee   :  { %v528_v37 = vadd.f32 %v1000_v25, %v485_v33  ;;  %v463_v42 = vld [vmem:[#allocation2] sm:$0xff]  ;;  %v748_v44 = vpop.f32.mrf.mxu0  ;;  %v768_v45 = vpop.f32.mrf.mxu1 }
  0xef   :  { %v483_v43 = vld [vmem:[#allocation2 + $0xa0] sm:$0xff]  ;;  %vm544_vm1 = vcmp.gt.f32.partialorder %v508_v36, 0.0  ;;  %v580_v46 = vmul.f32 0.01, %v508_v36  ;;  %428 = vst.msk [vmem:[#allocation2 + $0x20] sm:$0xff] %vm19_vm0, %v391_v38  ;;  %448 = vst.msk [vmem:[#allocation2 + $0xc0] sm:$0xff] %vm19_vm0, %v411_v39  ;;  %v506_v48 = vadd.f32 %v1000_v25, %v463_v42  ;;  %v394_v52 = vadd.f32 %v748_v44, %v63_v40 }
  0xf0   :  { %vm564_vm2 = vcmp.gt.f32.partialorder %v528_v37, 0.0  ;;  %v600_v47 = vmul.f32 0.01, %v528_v37  ;;  %v526_v49 = vadd.f32 %v1000_v25, %v483_v43  ;;  %v466_v50 = vld [vmem:[#allocation2 + $0x18] sm:$0xff]  ;;  %v414_v53 = vadd.f32 %v768_v45, %v83_v41  ;;  %v263_v55 = vpop.f32.mrf.mxu0  ;;  %v343_v56 = vpop.f32.mrf.mxu1  ;;  %v64_v33 = vld [vmem:[#allocation2 + $0x40] sm:$0xff] }
  0xf1   :  { %v486_v51 = vld [vmem:[#allocation2 + $0xb8] sm:$0xff]  ;;  %v616_v57 = vsel %vm544_vm1, %v508_v36, %v580_v46  ;;  %v509_v59 = vadd.f32 %v1000_v25, %v466_v50  ;;  %vm542_vm3 = vcmp.gt.f32.partialorder %v506_v48, 0.0  ;;  %v578_v0 = vmul.f32 0.01, %v506_v48  ;;  %431 = vst.msk [vmem:[#allocation2 + $0x38] sm:$0xff] %vm19_vm0, %v394_v52  ;;  %v84_v42 = vld [vmem:[#allocation2 + $0xe0] sm:$0xff] }
  0xf2   :  { %v636_v58 = vsel %vm564_vm2, %v528_v37, %v600_v47  ;;  %v529_v60 = vadd.f32 %v1000_v25, %v486_v51  ;;  %652 = vst.msk [vmem:[%s1231_s3 + $0x10] sm:$0xff] %vm19_vm0, %v616_v57  ;;  %vm562_vm4 = vcmp.gt.f32.partialorder %v526_v49, 0.0  ;;  %v598_v1 = vmul.f32 0.01, %v526_v49  ;;  %451 = vst.msk [vmem:[#allocation2 + $0xd8] sm:$0xff] %vm19_vm0, %v414_v53  ;;  %v751_v2 = vpop.f32.mrf.mxu0  ;;  %v771_v3 = vpop.f32.mrf.mxu1  ;;  %v464_v8 = vld [vmem:[#allocation2 + $0x8] sm:$0xff] }
  0xf3   :  { %672 = vst.msk [vmem:[%s1231_s3 + $0xb0] sm:$0xff] %vm19_vm0, %v636_v58  ;;  %vm545_vm5 = vcmp.gt.f32.partialorder %v509_v59, 0.0  ;;  %v581_v4 = vmul.f32 0.01, %v509_v59  ;;  %v614_v6 = vsel %vm542_vm3, %v506_v48, %v578_v0  ;;  %v484_v9 = vld [vmem:[#allocation2 + $0xa8] sm:$0xff]  ;;  %v392_v11 = vadd.f32 %v263_v55, %v61_v54  ;;  %v67_v47 = vld [vmem:[#allocation2 + $0x58] sm:$0xff] }
  0xf4   :  { %vm565_vm6 = vcmp.gt.f32.partialorder %v529_v60, 0.0  ;;  %v601_v5 = vmul.f32 0.01, %v529_v60  ;;  %v634_v7 = vsel %vm562_vm4, %v526_v49, %v598_v1  ;;  %v469_v10 = vld [vmem:[#allocation2 + $0x30] sm:$0xff]  ;;  %v412_v12 = vadd.f32 %v343_v56, %v81_v61  ;;  %v1024_v13 = vpop.f32.mrf.mxu0  ;;  %v1026_v14 = vpop.f32.mrf.mxu1  ;;  %650 = vst.msk [vmem:[%s1231_s3] sm:$0xff] %vm19_vm0, %v614_v6  ;;  %v87_v48 = vld [vmem:[#allocation2 + $0xf8] sm:$0xff] }
  0xf5   :  { %670 = vst.msk [vmem:[%s1231_s3 + $0xa0] sm:$0xff] %vm19_vm0, %v634_v7  ;;  %v617_v15 = vsel %vm545_vm5, %v509_v59, %v581_v4  ;;  %v507_v17 = vadd.f32 %v1000_v25, %v464_v8  ;;  %v527_v18 = vadd.f32 %v1000_v25, %v484_v9  ;;  %v489_v19 = vld [vmem:[#allocation2 + $0xd0] sm:$0xff]  ;;  %v512_v20 = vadd.f32 %v1000_v25, %v469_v10  ;;  %v65_v49 = vld [vmem:[#allocation2 + $0x48] sm:$0xff]  ;;  %v68_v7 = vld [vmem:[#allocation2 + $0x60] sm:$0xff] }
  0xf6   :  { %v637_v16 = vsel %vm565_vm6, %v529_v60, %v601_v5  ;;  %653 = vst.msk [vmem:[%s1231_s3 + $0x18] sm:$0xff] %vm19_vm0, %v617_v15  ;;  %v532_v21 = vadd.f32 %v1000_v25, %v489_v19  ;;  %v467_v22 = vld [vmem:[#allocation2 + $0x20] sm:$0xff]  ;;  %429 = vst.msk [vmem:[#allocation2 + $0x28] sm:$0xff] %vm19_vm0, %v392_v11  ;;  %v397_v24 = vadd.f32 %v751_v2, %v66_v62  ;;  %v1050_v27 = vpop.f32.mrf.mxu0  ;;  %v1052_v28 = vpop.f32.mrf.mxu1  ;;  %v85_v50 = vld [vmem:[#allocation2 + $0xe8] sm:$0xff] }
  0xf7   :  { %673 = vst.msk [vmem:[%s1231_s3 + $0xb8] sm:$0xff] %vm19_vm0, %v637_v16  ;;  %v487_v23 = vld [vmem:[#allocation2 + $0xc0] sm:$0xff]  ;;  %449 = vst.msk [vmem:[#allocation2 + $0xc8] sm:$0xff] %vm19_vm0, %v412_v12  ;;  %v417_v26 = vadd.f32 %v771_v3, %v86_v63  ;;  %vm543_vm7 = vcmp.gt.f32.partialorder %v507_v17, 0.0  ;;  %v579_v29 = vmul.f32 0.01, %v507_v17  ;;  %v510_v38 = vadd.f32 %v1000_v25, %v467_v22 }
  0xf8   :  { %vm563_vm8 = vcmp.gt.f32.partialorder %v527_v18, 0.0  ;;  %v599_v30 = vmul.f32 0.01, %v527_v18  ;;  %vm548_vm9 = vcmp.gt.f32.partialorder %v512_v20, 0.0  ;;  %v584_v31 = vmul.f32 0.01, %v512_v20  ;;  %v279_v34 = vpop.f32.mrf.mxu0  ;;  %v359_v35 = vpop.f32.mrf.mxu1 }
  0xf9   :  { %vm568_vm10 = vcmp.gt.f32.partialorder %v532_v21, 0.0  ;;  %v604_v32 = vmul.f32 0.01, %v532_v21  ;;  %434 = vst.msk [vmem:[#allocation2 + $0x50] sm:$0xff] %vm19_vm0, %v397_v24  ;;  %454 = vst.msk [vmem:[#allocation2 + $0xf0] sm:$0xff] %vm19_vm0, %v417_v26  ;;  %v615_v36 = vsel %vm543_vm7, %v507_v17, %v579_v29  ;;  %v530_v39 = vadd.f32 %v1000_v25, %v487_v23  ;;  %v470_v40 = vld [vmem:[#allocation2 + $0x38] sm:$0xff] }
  0xfa   :  { %v635_v37 = vsel %vm563_vm8, %v527_v18, %v599_v30  ;;  %v490_v41 = vld [vmem:[#allocation2 + $0xd8] sm:$0xff]  ;;  %651 = vst.msk [vmem:[%s1231_s3 + $0x8] sm:$0xff] %vm19_vm0, %v615_v36  ;;  %v620_v43 = vsel %vm548_vm9, %v512_v20, %v584_v31  ;;  %v513_v45 = vadd.f32 %v1000_v25, %v470_v40  ;;  %v755_v51 = vpop.f32.mrf.mxu0  ;;  %v775_v52 = vpop.f32.mrf.mxu1  ;;  %vm546_vm11 = vcmp.gt.f32.partialorder %v510_v38, 0.0  ;;  %v70_v5 = vld [vmem:[#allocation2 + $0x70] sm:$0xff]  ;;  %v88_v16 = vld [vmem:[#allocation2 + $0x100] sm:$0xff] }
  0xfb   :  { %671 = vst.msk [vmem:[%s1231_s3 + $0xa8] sm:$0xff] %vm19_vm0, %v635_v37  ;;  %v640_v44 = vsel %vm568_vm10, %v532_v21, %v604_v32  ;;  %v533_v46 = vadd.f32 %v1000_v25, %v490_v41  ;;  %656 = vst.msk [vmem:[%s1231_s3 + $0x30] sm:$0xff] %vm19_vm0, %v620_v43  ;;  %v582_v53 = vmul.f32 0.01, %v510_v38  ;;  %vm566_vm12 = vcmp.gt.f32.partialorder %v530_v39, 0.0  ;;  %v90_v6 = vld [vmem:[#allocation2 + $0x110] sm:$0xff] }
  0xfc   :  { %676 = vst.msk [vmem:[%s1231_s3 + $0xd0] sm:$0xff] %vm19_vm0, %v640_v44  ;;  %v602_v54 = vmul.f32 0.01, %v530_v39  ;;  %vm549_vm13 = vcmp.gt.f32.partialorder %v513_v45, 0.0  ;;  %v585_v55 = vmul.f32 0.01, %v513_v45  ;;  %v292_v57 = vpop.f32.mrf.mxu0  ;;  %v372_v58 = vpop.f32.mrf.mxu1  ;;  %v395_v63 = vadd.f32 %v1024_v13, %v64_v33 }
  0xfd   :  { %vm569_vm14 = vcmp.gt.f32.partialorder %v533_v46, 0.0  ;;  %v605_v56 = vmul.f32 0.01, %v533_v46  ;;  %v618_v59 = vsel %vm546_vm11, %v510_v38, %v582_v53  ;;  %v468_v61 = vld [vmem:[#allocation2 + $0x28] sm:$0xff]  ;;  %v415_v0 = vadd.f32 %v1026_v14, %v84_v42  ;;  %v71_v17 = vld [vmem:[#allocation2 + $0x78] sm:$0xff]  ;;  %v72_v36 = vld [vmem:[#allocation2 + $0x80] sm:$0xff] }
  0xfe   :  { %v638_v60 = vsel %vm566_vm12, %v530_v39, %v602_v54  ;;  %v488_v62 = vld [vmem:[#allocation2 + $0xc8] sm:$0xff]  ;;  %654 = vst.msk [vmem:[%s1231_s3 + $0x20] sm:$0xff] %vm19_vm0, %v618_v59  ;;  %v621_v1 = vsel %vm549_vm13, %v513_v45, %v585_v55  ;;  %v511_v3 = vadd.f32 %v1000_v25, %v468_v61  ;;  %v756_v8 = vpop.f32.mrf.mxu0  ;;  %v776_v9 = vpop.f32.mrf.mxu1  ;;  %432 = vst.msk [vmem:[#allocation2 + $0x40] sm:$0xff] %vm19_vm0, %v395_v63  ;;  %v91_v26 = vld [vmem:[#allocation2 + $0x118] sm:$0xff] }
  0xff   :  { %674 = vst.msk [vmem:[%s1231_s3 + $0xc0] sm:$0xff] %vm19_vm0, %v638_v60  ;;  %v641_v2 = vsel %vm569_vm14, %v533_v46, %v605_v56  ;;  %v531_v4 = vadd.f32 %v1000_v25, %v488_v62  ;;  %657 = vst.msk [vmem:[%s1231_s3 + $0x38] sm:$0xff] %vm19_vm0, %v621_v1  ;;  %v398_v12 = vadd.f32 %v1050_v27, %v67_v47  ;;  %v69_v27 = vld [vmem:[#allocation2 + $0x68] sm:$0xff]  ;;  %v75_v44 = vld [vmem:[#allocation2 + $0x98] sm:$0xff] }
 0x100   :  { %677 = vst.msk [vmem:[%s1231_s3 + $0xd8] sm:$0xff] %vm19_vm0, %v641_v2  ;;  %v473_v10 = vld [vmem:[#allocation2 + $0x50] sm:$0xff]  ;;  %452 = vst.msk [vmem:[#allocation2 + $0xe0] sm:$0xff] %vm19_vm0, %v415_v0  ;;  %v418_v13 = vadd.f32 %v1052_v28, %v87_v48  ;;  %v396_v14 = vadd.f32 %v279_v34, %v65_v49  ;;  %v416_v15 = vadd.f32 %v359_v35, %v85_v50  ;;  %vm547_vm15 = vcmp.gt.f32.partialorder %v511_v3, 0.0  ;;  %v295_v20 = vpop.f32.mrf.mxu0  ;;  %v89_v28 = vld [vmem:[#allocation2 + $0x108] sm:$0xff]  ;;  %v375_v29 = vpop.f32.mrf.mxu1 }
 0x101   :  { %v493_v11 = vld [vmem:[#allocation2 + $0xf0] sm:$0xff]  ;;  %v583_v18 = vmul.f32 0.01, %v511_v3  ;;  %vm567_vm1 = vcmp.gt.f32.partialorder %v531_v4, 0.0  ;;  %v603_v19 = vmul.f32 0.01, %v531_v4  ;;  %v516_v21 = vadd.f32 %v1000_v25, %v473_v10 }
 0x102   :  { %v536_v22 = vadd.f32 %v1000_v25, %v493_v11  ;;  %435 = vst.msk [vmem:[#allocation2 + $0x58] sm:$0xff] %vm19_vm0, %v398_v12  ;;  %455 = vst.msk [vmem:[#allocation2 + $0xf8] sm:$0xff] %vm19_vm0, %v418_v13  ;;  %v401_v23 = vadd.f32 %v755_v51, %v70_v5  ;;  %v421_v24 = vadd.f32 %v775_v52, %v90_v6  ;;  %v74_v34 = vld [vmem:[#allocation2 + $0x90] sm:$0xff]  ;;  %v759_v35 = vpop.f32.mrf.mxu0  ;;  %v73_v55 = vld [vmem:[#allocation2 + $0x88] sm:$0xff] }
 0x103   :  { %433 = vst.msk [vmem:[#allocation2 + $0x48] sm:$0xff] %vm19_vm0, %v396_v14  ;;  %453 = vst.msk [vmem:[#allocation2 + $0xe8] sm:$0xff] %vm19_vm0, %v416_v15  ;;  %v619_v30 = vsel %vm547_vm15, %v511_v3, %v583_v18  ;;  %v639_v31 = vsel %vm567_vm1, %v531_v4, %v603_v19  ;;  %v399_v32 = vadd.f32 %v292_v57, %v68_v7  ;;  %vm552_vm2 = vcmp.gt.f32.partialorder %v516_v21, 0.0 }
 0x104   :  { %v419_v33 = vadd.f32 %v372_v58, %v88_v16  ;;  %655 = vst.msk [vmem:[%s1231_s3 + $0x28] sm:$0xff] %vm19_vm0, %v619_v30  ;;  %675 = vst.msk [vmem:[%s1231_s3 + $0xc8] sm:$0xff] %vm19_vm0, %v639_v31  ;;  %v588_v37 = vmul.f32 0.01, %v516_v21  ;;  %vm572_vm3 = vcmp.gt.f32.partialorder %v536_v22, 0.0  ;;  %v402_v39 = vadd.f32 %v756_v8, %v71_v17  ;;  %v308_v43 = vpop.f32.mrf.mxu0 }
 0x105   :  { %v608_v38 = vmul.f32 0.01, %v536_v22  ;;  %438 = vst.msk [vmem:[#allocation2 + $0x70] sm:$0xff] %vm19_vm0, %v401_v23  ;;  %458 = vst.msk [vmem:[#allocation2 + $0x110] sm:$0xff] %vm19_vm0, %v421_v24  ;;  %v422_v40 = vadd.f32 %v776_v9, %v91_v26  ;;  %v400_v41 = vadd.f32 %v295_v20, %v69_v27  ;;  %v420_v42 = vadd.f32 %v375_v29, %v89_v28  ;;  %v471_v49 = vld [vmem:[#allocation2 + $0x40] sm:$0xff] }
 0x106   :  { %436 = vst.msk [vmem:[#allocation2 + $0x60] sm:$0xff] %vm19_vm0, %v399_v32  ;;  %456 = vst.msk [vmem:[#allocation2 + $0x100] sm:$0xff] %vm19_vm0, %v419_v33  ;;  %v624_v45 = vsel %vm552_vm2, %v516_v21, %v588_v37  ;;  %v405_v47 = vadd.f32 %v759_v35, %v74_v34  ;;  %v403_v48 = vadd.f32 %v308_v43, %v72_v36  ;;  %v760_v51 = vpop.f32.mrf.mxu0 }
 0x107   :  { %v644_v46 = vsel %vm572_vm3, %v536_v22, %v608_v38  ;;  %660 = vst.msk [vmem:[%s1231_s3 + $0x50] sm:$0xff] %vm19_vm0, %v624_v45  ;;  %v491_v50 = vld [vmem:[#allocation2 + $0xe0] sm:$0xff]  ;;  %439 = vst.msk [vmem:[#allocation2 + $0x78] sm:$0xff] %vm19_vm0, %v402_v39  ;;  %v514_v52 = vadd.f32 %v1000_v25, %v471_v49  ;;  %v406_v54 = vadd.f32 %v760_v51, %v75_v44 }
 0x108   :  { %680 = vst.msk [vmem:[%s1231_s3 + $0xf0] sm:$0xff] %vm19_vm0, %v644_v46  ;;  %459 = vst.msk [vmem:[#allocation2 + $0x118] sm:$0xff] %vm19_vm0, %v422_v40  ;;  %v534_v53 = vadd.f32 %v1000_v25, %v491_v50  ;;  %v311_v59 = vpop.f32.mrf.mxu0 }
 0x109   :  { %437 = vst.msk [vmem:[#allocation2 + $0x68] sm:$0xff] %vm19_vm0, %v400_v41  ;;  %457 = vst.msk [vmem:[#allocation2 + $0x108] sm:$0xff] %vm19_vm0, %v420_v42  ;;  %v474_v56 = vld [vmem:[#allocation2 + $0x58] sm:$0xff]  ;;  %vm550_vm4 = vcmp.gt.f32.partialorder %v514_v52, 0.0  ;;  %v586_v60 = vmul.f32 0.01, %v514_v52  ;;  %v404_v3 = vadd.f32 %v311_v59, %v73_v55 }
 0x10a   :  { %442 = vst.msk [vmem:[#allocation2 + $0x90] sm:$0xff] %vm19_vm0, %v405_v47  ;;  %440 = vst.msk [vmem:[#allocation2 + $0x80] sm:$0xff] %vm19_vm0, %v403_v48  ;;  %v494_v57 = vld [vmem:[#allocation2 + $0xf8] sm:$0xff]  ;;  %v472_v58 = vld [vmem:[#allocation2 + $0x48] sm:$0xff]  ;;  %vm570_vm5 = vcmp.gt.f32.partialorder %v534_v53, 0.0  ;;  %v517_v62 = vadd.f32 %v1000_v25, %v474_v56 }
 0x10b   :  { %v606_v61 = vmul.f32 0.01, %v534_v53  ;;  %443 = vst.msk [vmem:[#allocation2 + $0x98] sm:$0xff] %vm19_vm0, %v406_v54  ;;  %v537_v63 = vadd.f32 %v1000_v25, %v494_v57  ;;  %v515_v0 = vadd.f32 %v1000_v25, %v472_v58  ;;  %v492_v1 = vld [vmem:[#allocation2 + $0xe8] sm:$0xff]  ;;  %v622_v4 = vsel %vm550_vm4, %v514_v52, %v586_v60  ;;  %441 = vst.msk [vmem:[#allocation2 + $0x88] sm:$0xff] %vm19_vm0, %v404_v3 }
 0x10c   :  { %v477_v2 = vld [vmem:[#allocation2 + $0x70] sm:$0xff]  ;;  %v535_v6 = vadd.f32 %v1000_v25, %v492_v1  ;;  %658 = vst.msk [vmem:[%s1231_s3 + $0x40] sm:$0xff] %vm19_vm0, %v622_v4  ;;  %vm553_vm6 = vcmp.gt.f32.partialorder %v517_v62, 0.0  ;;  %v589_v11 = vmul.f32 0.01, %v517_v62 }
 0x10d   :  { %v642_v5 = vsel %vm570_vm5, %v534_v53, %v606_v61  ;;  %v520_v7 = vadd.f32 %v1000_v25, %v477_v2  ;;  %v497_v8 = vld [vmem:[#allocation2 + $0x110] sm:$0xff]  ;;  %v475_v9 = vld [vmem:[#allocation2 + $0x60] sm:$0xff]  ;;  %vm573_vm7 = vcmp.gt.f32.partialorder %v537_v63, 0.0  ;;  %v609_v12 = vmul.f32 0.01, %v537_v63 }
 0x10e   :  { %v495_v10 = vld [vmem:[#allocation2 + $0x100] sm:$0xff]  ;;  %678 = vst.msk [vmem:[%s1231_s3 + $0xe0] sm:$0xff] %vm19_vm0, %v642_v5  ;;  %vm551_vm8 = vcmp.gt.f32.partialorder %v515_v0, 0.0  ;;  %v587_v13 = vmul.f32 0.01, %v515_v0  ;;  %vm571_vm9 = vcmp.gt.f32.partialorder %v535_v6, 0.0  ;;  %v625_v15 = vsel %vm553_vm6, %v517_v62, %v589_v11 }
 0x10f   :  { %v607_v14 = vmul.f32 0.01, %v535_v6  ;;  %v645_v16 = vsel %vm573_vm7, %v537_v63, %v609_v12  ;;  %vm556_vm10 = vcmp.gt.f32.partialorder %v520_v7, 0.0  ;;  %v592_v17 = vmul.f32 0.01, %v520_v7  ;;  %v478_v18 = vld [vmem:[#allocation2 + $0x78] sm:$0xff] }
 0x110   :  { %v498_v19 = vld [vmem:[#allocation2 + $0x118] sm:$0xff]  ;;  %661 = vst.msk [vmem:[%s1231_s3 + $0x58] sm:$0xff] %vm19_vm0, %v625_v15  ;;  %681 = vst.msk [vmem:[%s1231_s3 + $0xf8] sm:$0xff] %vm19_vm0, %v645_v16  ;;  %v623_v20 = vsel %vm551_vm8, %v515_v0, %v587_v13  ;;  %v540_v22 = vadd.f32 %v1000_v25, %v497_v8  ;;  %v518_v23 = vadd.f32 %v1000_v25, %v475_v9  ;;  %v476_v24 = vld [vmem:[#allocation2 + $0x68] sm:$0xff] }
 0x111   :  { %v643_v21 = vsel %vm571_vm9, %v535_v6, %v607_v14  ;;  %v496_v26 = vld [vmem:[#allocation2 + $0x108] sm:$0xff]  ;;  %659 = vst.msk [vmem:[%s1231_s3 + $0x48] sm:$0xff] %vm19_vm0, %v623_v20  ;;  %v628_v27 = vsel %vm556_vm10, %v520_v7, %v592_v17  ;;  %v538_v28 = vadd.f32 %v1000_v25, %v495_v10  ;;  %v521_v29 = vadd.f32 %v1000_v25, %v478_v18  ;;  %v481_v31 = vld [vmem:[#allocation2 + $0x90] sm:$0xff]  ;;  %v479_v32 = vld [vmem:[#allocation2 + $0x80] sm:$0xff] }
 0x112   :  { %679 = vst.msk [vmem:[%s1231_s3 + $0xe8] sm:$0xff] %vm19_vm0, %v643_v21  ;;  %v541_v30 = vadd.f32 %v1000_v25, %v498_v19  ;;  %v482_v33 = vld [vmem:[#allocation2 + $0x98] sm:$0xff]  ;;  %664 = vst.msk [vmem:[%s1231_s3 + $0x70] sm:$0xff] %vm19_vm0, %v628_v27  ;;  %vm576_vm11 = vcmp.gt.f32.partialorder %v540_v22, 0.0  ;;  %v612_v34 = vmul.f32 0.01, %v540_v22  ;;  %v519_v43 = vadd.f32 %v1000_v25, %v476_v24 }
 0x113   :  { %vm554_vm12 = vcmp.gt.f32.partialorder %v518_v23, 0.0  ;;  %v590_v35 = vmul.f32 0.01, %v518_v23  ;;  %vm574_vm13 = vcmp.gt.f32.partialorder %v538_v28, 0.0  ;;  %v610_v36 = vmul.f32 0.01, %v538_v28 }
 0x114   :  { %vm557_vm14 = vcmp.gt.f32.partialorder %v521_v29, 0.0  ;;  %v593_v37 = vmul.f32 0.01, %v521_v29  ;;  %v648_v38 = vsel %vm576_vm11, %v540_v22, %v612_v34  ;;  %vm577_vm15 = vcmp.gt.f32.partialorder %v541_v30, 0.0  ;;  %v480_v49 = vld [vmem:[#allocation2 + $0x88] sm:$0xff] }
 0x115   :  { %v626_v39 = vsel %vm554_vm12, %v518_v23, %v590_v35  ;;  %v613_v40 = vmul.f32 0.01, %v541_v30  ;;  %684 = vst.msk [vmem:[%s1231_s3 + $0x110] sm:$0xff] %vm19_vm0, %v648_v38  ;;  %v646_v41 = vsel %vm574_vm13, %v538_v28, %v610_v36  ;;  %v539_v44 = vadd.f32 %v1000_v25, %v496_v26 }
 0x116   :  { %662 = vst.msk [vmem:[%s1231_s3 + $0x60] sm:$0xff] %vm19_vm0, %v626_v39  ;;  %v629_v42 = vsel %vm557_vm14, %v521_v29, %v593_v37  ;;  %682 = vst.msk [vmem:[%s1231_s3 + $0x100] sm:$0xff] %vm19_vm0, %v646_v41  ;;  %v524_v46 = vadd.f32 %v1000_v25, %v481_v31  ;;  %v522_v47 = vadd.f32 %v1000_v25, %v479_v32  ;;  %vm555_vm1 = vcmp.gt.f32.partialorder %v519_v43, 0.0 }
 0x117   :  { %665 = vst.msk [vmem:[%s1231_s3 + $0x78] sm:$0xff] %vm19_vm0, %v629_v42  ;;  %v649_v45 = vsel %vm577_vm15, %v541_v30, %v613_v40  ;;  %v525_v48 = vadd.f32 %v1000_v25, %v482_v33  ;;  %v591_v50 = vmul.f32 0.01, %v519_v43  ;;  %vm575_vm2 = vcmp.gt.f32.partialorder %v539_v44, 0.0 }
 0x118   :  { %685 = vst.msk [vmem:[%s1231_s3 + $0x118] sm:$0xff] %vm19_vm0, %v649_v45  ;;  %v611_v51 = vmul.f32 0.01, %v539_v44  ;;  %vm560_vm3 = vcmp.gt.f32.partialorder %v524_v46, 0.0  ;;  %v596_v52 = vmul.f32 0.01, %v524_v46  ;;  %v523_v59 = vadd.f32 %v1000_v25, %v480_v49 }
 0x119   :  { %vm558_vm4 = vcmp.gt.f32.partialorder %v522_v47, 0.0  ;;  %v594_v53 = vmul.f32 0.01, %v522_v47  ;;  %v627_v54 = vsel %vm555_vm1, %v519_v43, %v591_v50  ;;  %vm561_vm5 = vcmp.gt.f32.partialorder %v525_v48, 0.0 }
 0x11a   :  { %v647_v55 = vsel %vm575_vm2, %v539_v44, %v611_v51  ;;  %v597_v56 = vmul.f32 0.01, %v525_v48  ;;  %663 = vst.msk [vmem:[%s1231_s3 + $0x68] sm:$0xff] %vm19_vm0, %v627_v54  ;;  %v632_v57 = vsel %vm560_vm3, %v524_v46, %v596_v52  ;;  %vm559_vm6 = vcmp.gt.f32.partialorder %v523_v59, 0.0 }
 0x11b   :  { %683 = vst.msk [vmem:[%s1231_s3 + $0x108] sm:$0xff] %vm19_vm0, %v647_v55  ;;  %v630_v58 = vsel %vm558_vm4, %v522_v47, %v594_v53  ;;  %668 = vst.msk [vmem:[%s1231_s3 + $0x90] sm:$0xff] %vm19_vm0, %v632_v57  ;;  %v595_v61 = vmul.f32 0.01, %v523_v59 }
 0x11c   :  { %666 = vst.msk [vmem:[%s1231_s3 + $0x80] sm:$0xff] %vm19_vm0, %v630_v58  ;;  %v633_v60 = vsel %vm561_vm5, %v525_v48, %v597_v56 }
 0x11d   :  { %669 = vst.msk [vmem:[%s1231_s3 + $0x98] sm:$0xff] %vm19_vm0, %v633_v60  ;;  %v631_v62 = vsel %vm559_vm6, %v523_v59, %v595_v61 }
 0x11e   :  { %667 = vst.msk [vmem:[%s1231_s3 + $0x88] sm:$0xff] %vm19_vm0, %v631_v62 }

// kernel: critic_forward.5
= control target key start
LH: loop header
LB: loop body
LE: loop exit
PB: predicated region body
PF: predicated region fallthrough
CT: control target
= control target key end

     0   :  { %vm19_vm0 = vcmask 261120   ;;  %v575_v56 = vmov 0.0   ;;  %s767_s1 = inlined_call_operand.vmem [shape: bf16[512,32], index: 1, kind: input, shape index: {}]   ;;  %s768_s0 = inlined_call_operand.vmem [shape: f32[32,512], index: 0, kind: input, shape index: {}]   ;;  %s769_s2 = inlined_call_operand.vmem [shape: f32[1,32], index: 2, kind: input, shape index: {}]   ;;  %s770_s3 = inlined_call_operand.vmem [shape: f32[32,32], index: 3, kind: output, shape index: {}]  }
   0x1   :  { %v543_v0 = vld [vmem:[%s767_s1 + $0x78] sm:$0xff]   ;;  %v547_v4 = vld [vmem:[%s767_s1 + $0x70] sm:$0xff]   ;;  %v551_v8 = vld [vmem:[%s767_s1 + $0x68] sm:$0xff]   ;;  %20 = vst.msk [vmem:[#allocation2] sm:$0xff] %vm19_vm0, %v575_v56 }
   0x2   :  { %v544_v1 = vld [vmem:[%s767_s1 + $0xf8] sm:$0xff]   ;;  %486 = vmatprep.subr.bf16.mxu0 %v543_v0  ;;  %v548_v5 = vld [vmem:[%s767_s1 + $0xf0] sm:$0xff]   ;;  %v552_v9 = vld [vmem:[%s767_s1 + $0xe8] sm:$0xff]   ;;  %21 = vst.msk [vmem:[#allocation2 + $0x8] sm:$0xff] %vm19_vm0, %v575_v56 }
   0x3   :  { %v545_v2 = vld [vmem:[%s767_s1 + $0x38] sm:$0xff]   ;;  %514 = vmatprep.subr.bf16.mxu1 %v544_v1  ;;  %v549_v6 = vld [vmem:[%s767_s1 + $0x30] sm:$0xff]   ;;  %v553_v10 = vld [vmem:[%s767_s1 + $0x28] sm:$0xff]   ;;  %22 = vst.msk [vmem:[#allocation2 + $0x10] sm:$0xff] %vm19_vm0, %v575_v56 }
   0x4   :  { %v546_v3 = vld [vmem:[%s767_s1 + $0xb8] sm:$0xff]   ;;  %487 = vmatpush3.bf16.msra.mxu0 %v545_v2  ;;  %v550_v7 = vld [vmem:[%s767_s1 + $0xb0] sm:$0xff]   ;;  %v554_v11 = vld [vmem:[%s767_s1 + $0xa8] sm:$0xff]   ;;  %23 = vst.msk [vmem:[#allocation2 + $0x18] sm:$0xff] %vm19_vm0, %v575_v56 }
   0x5   :  { %515 = vmatpush3.bf16.msra.mxu1 %v546_v3  ;;  %488 = vmatprep.subr.bf16.mxu0 %v547_v4  ;;  %v555_v12 = vld [vmem:[%s767_s1 + $0x60] sm:$0xff]   ;;  %v559_v16 = vld [vmem:[%s767_s1 + $0x58] sm:$0xff]   ;;  %v563_v20 = vld [vmem:[%s767_s1 + $0x50] sm:$0xff]  }
   0x6   :  { %516 = vmatprep.subr.bf16.mxu1 %v548_v5  ;;  %v556_v13 = vld [vmem:[%s767_s1 + $0xe0] sm:$0xff]   ;;  %v560_v17 = vld [vmem:[%s767_s1 + $0xd8] sm:$0xff]   ;;  %v564_v21 = vld [vmem:[%s767_s1 + $0xd0] sm:$0xff]  }
   0x7   :  { %v557_v14 = vld [vmem:[%s767_s1 + $0x20] sm:$0xff]   ;;  %v561_v18 = vld [vmem:[%s767_s1 + $0x18] sm:$0xff]   ;;  %v565_v22 = vld [vmem:[%s767_s1 + $0x10] sm:$0xff]  }
   0x8   :  { %489 = vmatpush3.bf16.msra.mxu0 %v549_v6  ;;  %v558_v15 = vld [vmem:[%s767_s1 + $0xa0] sm:$0xff]   ;;  %v562_v19 = vld [vmem:[%s767_s1 + $0x98] sm:$0xff]   ;;  %v566_v23 = vld [vmem:[%s767_s1 + $0x90] sm:$0xff]  }
   0x9   :  { %517 = vmatpush3.bf16.msra.mxu1 %v550_v7  ;;  %490 = vmatprep.subr.bf16.mxu0 %v551_v8  ;;  %v567_v24 = vld [vmem:[%s767_s1 + $0x48] sm:$0xff]   ;;  %v571_v28 = vld [vmem:[%s767_s1 + $0x40] sm:$0xff]   ;;  %v31_v34 = vld [vmem:[%s768_s0 + $0x18] sm:$0xff] }
   0xa   :  { %518 = vmatprep.subr.bf16.mxu1 %v552_v9  ;;  %v568_v25 = vld [vmem:[%s767_s1 + $0xc8] sm:$0xff]   ;;  %v572_v29 = vld [vmem:[%s767_s1 + $0xc0] sm:$0xff]   ;;  %v35_v36 = vld [vmem:[%s768_s0 + $0x38] sm:$0xff] }
   0xb   :  { %v569_v26 = vld [vmem:[%s767_s1 + $0x8] sm:$0xff]   ;;  %v573_v30 = vld [vmem:[%s767_s1] sm:$0xff]   ;;  %v47_v39 = vpack.c.bf16 %v35_v36, %v31_v34  ;;  %v30_v41 = vld [vmem:[%s768_s0 + $0x10] sm:$0xff] }
   0xc   :  { %491 = vmatpush3.bf16.msra.mxu0 %v553_v10  ;;  %v570_v27 = vld [vmem:[%s767_s1 + $0x88] sm:$0xff]   ;;  %v574_v31 = vld [vmem:[%s767_s1 + $0x80] sm:$0xff]   ;;  %v34_v42 = vld [vmem:[%s768_s0 + $0x30] sm:$0xff] }
   0xd   :  { %519 = vmatpush3.bf16.msra.mxu1 %v554_v11  ;;  %492 = vmatprep.subr.bf16.mxu0 %v555_v12  ;;  %v29_v32 = vld [vmem:[%s768_s0 + $0x8] sm:$0xff]  ;;  %v28_v37 = vld [vmem:[%s768_s0] sm:$0xff]  ;;  %v46_v44 = vpack.c.bf16 %v34_v42, %v30_v41  ;;  %v39_v46 = vld [vmem:[%s768_s0 + $0x58] sm:$0xff] }
   0xe   :  { %520 = vmatprep.subr.bf16.mxu1 %v556_v13  ;;  %v33_v33 = vld [vmem:[%s768_s0 + $0x28] sm:$0xff]  ;;  %v32_v38 = vld [vmem:[%s768_s0 + $0x20] sm:$0xff]  ;;  %v43_v47 = vld [vmem:[%s768_s0 + $0x78] sm:$0xff]  ;;  %389 = vmatprep.mubr.bf16.mxu1 %v47_v39 }
   0xf   :  { %v45_v35 = vpack.c.bf16 %v33_v33, %v29_v32  ;;  %v44_v40 = vpack.c.bf16 %v32_v38, %v28_v37  ;;  %v37_v43 = vld [vmem:[%s768_s0 + $0x48] sm:$0xff]  ;;  %v51_v49 = vpack.c.bf16 %v43_v47, %v39_v46  ;;  %v36_v50 = vld [vmem:[%s768_s0 + $0x40] sm:$0xff]  ;;  %v38_v52 = vld [vmem:[%s768_s0 + $0x50] sm:$0xff] }
  0x10   :  { %493 = vmatpush3.bf16.msra.mxu0 %v557_v14  ;;  %v41_v45 = vld [vmem:[%s768_s0 + $0x68] sm:$0xff]  ;;  %v40_v51 = vld [vmem:[%s768_s0 + $0x60] sm:$0xff]  ;;  %v42_v53 = vld [vmem:[%s768_s0 + $0x70] sm:$0xff] }
  0x11   :  { %521 = vmatpush3.bf16.msra.mxu1 %v558_v15  ;;  %494 = vmatprep.subr.bf16.mxu0 %v559_v16  ;;  %v49_v48 = vpack.c.bf16 %v41_v45, %v37_v43  ;;  %v48_v54 = vpack.c.bf16 %v40_v51, %v36_v50  ;;  %v50_v55 = vpack.c.bf16 %v42_v53, %v38_v52  ;;  %v24_v0 = vld [vmem:[#allocation2] sm:$0xff]  ;;  %v25_v9 = vld [vmem:[#allocation2 + $0x8] sm:$0xff] }
  0x12   :  { %522 = vmatprep.subr.bf16.mxu1 %v560_v17  ;;  %340 = vmatprep.mubr.bf16.mxu0 %v45_v35 }
  0x14   :  { %495 = vmatpush3.bf16.msra.mxu0 %v561_v18  ;;  %v26_v18 = vld [vmem:[#allocation2 + $0x10] sm:$0xff] }
  0x15   :  { %523 = vmatpush3.bf16.msra.mxu1 %v562_v19  ;;  %496 = vmatprep.subr.bf16.mxu0 %v563_v20 }
  0x16   :  { %524 = vmatprep.subr.bf16.mxu1 %v564_v21 }
  0x18   :  { %497 = vmatpush3.bf16.msra.mxu0 %v565_v22  ;;  %v485_v22 = vld [vmem:[%s769_s2] ss:$0 sm:$0xff] }
  0x19   :  { %525 = vmatpush3.bf16.msra.mxu1 %v566_v23  ;;  %498 = vmatprep.subr.bf16.mxu0 %v567_v24 }
  0x1a   :  { %526 = vmatprep.subr.bf16.mxu1 %v568_v25 }
  0x1c   :  { %499 = vmatpush3.bf16.msra.mxu0 %v569_v26 }
  0x1d   :  { %527 = vmatpush3.bf16.msra.mxu1 %v570_v27  ;;  %500 = vmatprep.subr.bf16.mxu0 %v571_v28  ;;  %v27_v28 = vld [vmem:[#allocation2 + $0x18] sm:$0xff] }
  0x1e   :  { %528 = vmatprep.subr.bf16.mxu1 %v572_v29 }
  0x20   :  { %501 = vmatpush3.bf16.msra.mxu0 %v573_v30 }
  0x21   :  { %529 = vmatpush3.bf16.msra.mxu1 %v574_v31 }
  0x23   :  { %341 = vmatmul.mubr.bf16.vlgmr.msra.gmra.mxu0 %v44_v40 }
  0x24   :  { %390 = vmatmul.mubr.bf16.vlgmr.msra.gmra.mxu1 %v46_v44  ;;  %348 = vmatprep.mubr.bf16.mxu0 %v49_v48 }
  0x25   :  { %397 = vmatprep.mubr.bf16.mxu1 %v51_v49 }
  0x2b   :  { %349 = vmatmul.mubr.bf16.gmra.mxu0 %v48_v54 }
  0x2c   :  { %398 = vmatmul.mubr.bf16.gmra.mxu1 %v50_v55 }
  0xe3   :  { %v502_v57 = vpop.f32.mrf.mxu0 }
  0xe4   :  { %v530_v58 = vpop.f32.mrf.mxu1 }
  0xe5   :  { %v503_v59 = vpop.f32.mrf.mxu0 }
  0xe6   :  { %v504_v60 = vadd.f32 %v503_v59, %v502_v57  ;;  %v531_v61 = vpop.f32.mrf.mxu1 }
  0xe7   :  { %v532_v62 = vadd.f32 %v531_v61, %v530_v58  ;;  %v505_v63 = vpop.f32.mrf.mxu0 }
  0xe8   :  { %v533_v1 = vpop.f32.mrf.mxu1 }
  0xe9   :  { %v392_v2 = vadd.f32 %v532_v62, %v504_v60  ;;  %v506_v3 = vpop.f32.mrf.mxu0 }
  0xea   :  { %v507_v4 = vadd.f32 %v506_v3, %v505_v63  ;;  %v534_v5 = vpop.f32.mrf.mxu1 }
  0xeb   :  { %v406_v6 = vadd.f32 %v392_v2, %v24_v0  ;;  %v535_v7 = vadd.f32 %v534_v5, %v533_v1  ;;  %v508_v8 = vpop.f32.mrf.mxu0 }
  0xec   :  { %v536_v10 = vpop.f32.mrf.mxu1 }
  0xed   :  { %411 = vst.msk [vmem:[#allocation2] sm:$0xff] %vm19_vm0, %v406_v6  ;;  %v395_v11 = vadd.f32 %v535_v7, %v507_v4  ;;  %v509_v12 = vpop.f32.mrf.mxu0 }
  0xee   :  { %v510_v13 = vadd.f32 %v509_v12, %v508_v8  ;;  %v537_v14 = vpop.f32.mrf.mxu1 }
  0xef   :  { %v407_v15 = vadd.f32 %v395_v11, %v25_v9  ;;  %v538_v16 = vadd.f32 %v537_v14, %v536_v10  ;;  %v511_v17 = vpop.f32.mrf.mxu0 }
  0xf0   :  { %v539_v19 = vpop.f32.mrf.mxu1 }
  0xf1   :  { %412 = vst.msk [vmem:[#allocation2 + $0x8] sm:$0xff] %vm19_vm0, %v407_v15  ;;  %v400_v20 = vadd.f32 %v538_v16, %v510_v13  ;;  %v512_v21 = vpop.f32.mrf.mxu0 }
  0xf2   :  { %v513_v23 = vadd.f32 %v512_v21, %v511_v17  ;;  %v540_v24 = vpop.f32.mrf.mxu1 }
  0xf3   :  { %v408_v25 = vadd.f32 %v400_v20, %v26_v18  ;;  %v541_v26 = vadd.f32 %v540_v24, %v539_v19 }
  0xf4   :  { %v418_v27 = vld [vmem:[#allocation2] sm:$0xff] }
  0xf5   :  { %v429_v29 = vadd.f32 %v485_v22, %v418_v27  ;;  %413 = vst.msk [vmem:[#allocation2 + $0x10] sm:$0xff] %vm19_vm0, %v408_v25  ;;  %v403_v30 = vadd.f32 %v541_v26, %v513_v23 }
  0xf7   :  { %vm433_vm1 = vcmp.gt.f32.partialorder %v429_v29, 0.0  ;;  %v437_v31 = vmul.f32 0.01, %v429_v29  ;;  %v409_v32 = vadd.f32 %v403_v30, %v27_v28 }
  0xf8   :  { %v419_v33 = vld [vmem:[#allocation2 + $0x8] sm:$0xff] }
  0xf9   :  { %v441_v34 = vsel %vm433_vm1, %v429_v29, %v437_v31  ;;  %v430_v35 = vadd.f32 %v485_v22, %v419_v33  ;;  %414 = vst.msk [vmem:[#allocation2 + $0x18] sm:$0xff] %vm19_vm0, %v409_v32 }
  0xfa   :  { %445 = vst.msk [vmem:[%s770_s3] sm:$0xff] %vm19_vm0, %v441_v34 }
  0xfb   :  { %vm434_vm2 = vcmp.gt.f32.partialorder %v430_v35, 0.0  ;;  %v438_v36 = vmul.f32 0.01, %v430_v35 }
  0xfc   :  { %v420_v37 = vld [vmem:[#allocation2 + $0x10] sm:$0xff] }
  0xfd   :  { %v442_v38 = vsel %vm434_vm2, %v430_v35, %v438_v36  ;;  %v431_v39 = vadd.f32 %v485_v22, %v420_v37 }
  0xfe   :  { %446 = vst.msk [vmem:[%s770_s3 + $0x8] sm:$0xff] %vm19_vm0, %v442_v38 }
  0xff   :  { %vm435_vm3 = vcmp.gt.f32.partialorder %v431_v39, 0.0  ;;  %v439_v40 = vmul.f32 0.01, %v431_v39 }
 0x100   :  { %v421_v41 = vld [vmem:[#allocation2 + $0x18] sm:$0xff] }
 0x101   :  { %v443_v42 = vsel %vm435_vm3, %v431_v39, %v439_v40  ;;  %v432_v43 = vadd.f32 %v485_v22, %v421_v41 }
 0x102   :  { %447 = vst.msk [vmem:[%s770_s3 + $0x10] sm:$0xff] %vm19_vm0, %v443_v42 }
 0x103   :  { %vm436_vm4 = vcmp.gt.f32.partialorder %v432_v43, 0.0  ;;  %v440_v44 = vmul.f32 0.01, %v432_v43 }
 0x105   :  { %v444_v45 = vsel %vm436_vm4, %v432_v43, %v440_v44 }
 0x106   :  { %448 = vst.msk [vmem:[%s770_s3 + $0x18] sm:$0xff] %vm19_vm0, %v444_v45 }

// kernel: critic_forward.7
= control target key start
LH: loop header
LB: loop body
LE: loop exit
PB: predicated region body
PF: predicated region fallthrough
CT: control target
= control target key end

     0   :  { %v982_v36 = vmov 1983009808   ;;  %v52_v38 = vlaneseq  ;;  %vm570_vm0 = vcmask 1043456   ;;  %vm984_vm1 = vmmov 0   ;;  %s1291_s3 = inlined_call_operand.vmem [shape: bf16[512,256], index: 3, kind: input, shape index: {}]   ;;  %s1292_s0 = inlined_call_operand.vmem [shape: f32[2,512], index: 0, kind: input, shape index: {}]   ;;  %s1293_s5 = inlined_call_operand.vmem [shape: f32[4,12], index: 5, kind: input, shape index: {}]   ;;  %s1294_s7 = inlined_call_operand.vmem [shape: f32[4,32], index: 7, kind: input, shape index: {}]   ;;  %s1295_s1 = inlined_call_operand.vmem [shape: f32[2,4], index: 1, kind: input, shape index: {}]   ;;  %s1296_s2 = inlined_call_operand.vmem [shape: f32[2,4], index: 2, kind: input, shape index: {}]   ;;  %s1297_s4 = inlined_call_operand.vmem [shape: f32[1,256], index: 4, kind: input, shape index: {}]   ;;  %s1298_s9 = inlined_call_operand.vmem [shape: f32[1,256], index: 9, kind: input, shape index: {}]   ;;  %s1299_s6 = inlined_call_operand.vmem [shape: f32[1,12], index: 6, kind: input, shape index: {}]   ;;  %s1300_s8 = inlined_call_operand.vmem [shape: f32[1,32], index: 8, kind: input, shape index: {}]   ;;  %s1301_s11 = inlined_call_operand.vmem [shape: f32[1,32], index: 11, kind: input, shape index: {}]   ;;  %s1302_s10 = inlined_call_operand.vmem [shape: f32[1,12], index: 10, kind: input, shape index: {}]   ;;  %s1303_s12 = inlined_call_operand.<no memory space> [shape: f32[1,1], index: 12, kind: input, shape index: {}]   ;;  %s1304_s13 = inlined_call_operand.vmem [shape: f32[2,1], index: 13, kind: output, shape index: {}]  }
   0x1   :  { %v885_v0 = vld [vmem:[%s1291_s3 + $0x74] ss:$8 sps:$4 sm:$0xff]   ;;  %v889_v2 = vld [vmem:[%s1291_s3 + $0x70] ss:$8 sps:$4 sm:$0xff]   ;;  %v891_v4 = vld [vmem:[%s1291_s3 + $0x64] ss:$8 sps:$4 sm:$0xff]   ;;  %v50_v37 = vunpack.c.l.s4 %v982_v36 }
   0x2   :  { %v887_v1 = vld [vmem:[%s1291_s3 + $0x174] ss:$8 sps:$4 sm:$0xff]   ;;  %469 = vmatprep.subr.bf16.mxu0 %v885_v0  ;;  %v890_v3 = vld [vmem:[%s1291_s3 + $0x170] ss:$8 sps:$4 sm:$0xff]   ;;  %v893_v5 = vld [vmem:[%s1291_s3 + $0x164] ss:$8 sps:$4 sm:$0xff]  }
   0x3   :  { %510 = vmatprep.subr.bf16.mxu1 %v887_v1  ;;  %470 = vmatpush1.bf16.msra.mxu0 %v889_v2  ;;  %v895_v6 = vld [vmem:[%s1291_s3 + $0x60] ss:$8 sps:$4 sm:$0xff]   ;;  %v897_v8 = vld [vmem:[%s1291_s3 + $0x54] ss:$8 sps:$4 sm:$0xff]   ;;  %v901_v10 = vld [vmem:[%s1291_s3 + $0x50] ss:$8 sps:$4 sm:$0xff]   ;;  %v51_v42 = vunpack.c.0.s8 %v50_v37 }
   0x4   :  { %511 = vmatpush1.bf16.msra.mxu1 %v890_v3  ;;  %471 = vmatprep.subr.bf16.mxu0 %v891_v4  ;;  %v896_v7 = vld [vmem:[%s1291_s3 + $0x160] ss:$8 sps:$4 sm:$0xff]   ;;  %v899_v9 = vld [vmem:[%s1291_s3 + $0x154] ss:$8 sps:$4 sm:$0xff]   ;;  %v902_v11 = vld [vmem:[%s1291_s3 + $0x150] ss:$8 sps:$4 sm:$0xff]  }
   0x5   :  { %512 = vmatprep.subr.bf16.mxu1 %v893_v5  ;;  %v903_v12 = vld [vmem:[%s1291_s3 + $0x44] ss:$8 sps:$4 sm:$0xff]   ;;  %v907_v14 = vld [vmem:[%s1291_s3 + $0x40] ss:$8 sps:$4 sm:$0xff]   ;;  %v909_v16 = vld [vmem:[%s1291_s3 + $0x34] ss:$8 sps:$4 sm:$0xff]  }
   0x6   :  { %v905_v13 = vld [vmem:[%s1291_s3 + $0x144] ss:$8 sps:$4 sm:$0xff]   ;;  %v908_v15 = vld [vmem:[%s1291_s3 + $0x140] ss:$8 sps:$4 sm:$0xff]   ;;  %v911_v17 = vld [vmem:[%s1291_s3 + $0x134] ss:$8 sps:$4 sm:$0xff]  }
   0x7   :  { %472 = vmatpush1.bf16.msra.mxu0 %v895_v6  ;;  %v913_v18 = vld [vmem:[%s1291_s3 + $0x30] ss:$8 sps:$4 sm:$0xff]   ;;  %v915_v20 = vld [vmem:[%s1291_s3 + $0x24] ss:$8 sps:$4 sm:$0xff]   ;;  %v919_v22 = vld [vmem:[%s1291_s3 + $0x20] ss:$8 sps:$4 sm:$0xff]  }
   0x8   :  { %513 = vmatpush1.bf16.msra.mxu1 %v896_v7  ;;  %473 = vmatprep.subr.bf16.mxu0 %v897_v8  ;;  %v914_v19 = vld [vmem:[%s1291_s3 + $0x130] ss:$8 sps:$4 sm:$0xff]   ;;  %v917_v21 = vld [vmem:[%s1291_s3 + $0x124] ss:$8 sps:$4 sm:$0xff]   ;;  %v920_v23 = vld [vmem:[%s1291_s3 + $0x120] ss:$8 sps:$4 sm:$0xff]  }
   0x9   :  { %514 = vmatprep.subr.bf16.mxu1 %v899_v9  ;;  %v921_v24 = vld [vmem:[%s1291_s3 + $0x14] ss:$8 sps:$4 sm:$0xff]   ;;  %v925_v26 = vld [vmem:[%s1291_s3 + $0x10] ss:$8 sps:$4 sm:$0xff]   ;;  %v927_v28 = vld [vmem:[%s1291_s3 + $0x4] ss:$8 sps:$4 sm:$0xff]  }
   0xa   :  { %v923_v25 = vld [vmem:[%s1291_s3 + $0x114] ss:$8 sps:$4 sm:$0xff]   ;;  %v926_v27 = vld [vmem:[%s1291_s3 + $0x110] ss:$8 sps:$4 sm:$0xff]   ;;  %v929_v29 = vld [vmem:[%s1291_s3 + $0x104] ss:$8 sps:$4 sm:$0xff]  }
   0xb   :  { %474 = vmatpush1.bf16.msra.mxu0 %v901_v10  ;;  %v931_v30 = vld [vmem:[%s1291_s3] ss:$8 sps:$4 sm:$0xff]   ;;  %v933_v32 = vld [vmem:[%s1291_s3 + $0xf4] ss:$8 sps:$4 sm:$0xff]   ;;  %v937_v34 = vld [vmem:[%s1291_s3 + $0xf0] ss:$8 sps:$4 sm:$0xff]  }
   0xc   :  { %515 = vmatpush1.bf16.msra.mxu1 %v902_v11  ;;  %475 = vmatprep.subr.bf16.mxu0 %v903_v12  ;;  %v932_v31 = vld [vmem:[%s1291_s3 + $0x100] ss:$8 sps:$4 sm:$0xff]   ;;  %v935_v33 = vld [vmem:[%s1291_s3 + $0x1f4] ss:$8 sps:$4 sm:$0xff]   ;;  %v938_v35 = vld [vmem:[%s1291_s3 + $0x1f0] ss:$8 sps:$4 sm:$0xff]  }
   0xd   :  { %516 = vmatprep.subr.bf16.mxu1 %v905_v13  ;;  %v939_v39 = vld [vmem:[%s1291_s3 + $0xe4] ss:$8 sps:$4 sm:$0xff]   ;;  %v943_v41 = vld [vmem:[%s1291_s3 + $0xe0] ss:$8 sps:$4 sm:$0xff]   ;;  %v1172_v43 = vshrl.u32 %v52_v38, 7  ;;  %vm566_vm2 = vcmask 31744  }
   0xe   :  { %v941_v40 = vld [vmem:[%s1291_s3 + $0x1e4] ss:$8 sps:$4 sm:$0xff]   ;;  %v944_v44 = vld [vmem:[%s1291_s3 + $0x1e0] ss:$8 sps:$4 sm:$0xff]   ;;  %v945_v45 = vld [vmem:[%s1291_s3 + $0xd4] ss:$8 sps:$4 sm:$0xff]  }
   0xf   :  { %476 = vmatpush1.bf16.msra.mxu0 %v907_v14  ;;  %v947_v46 = vld [vmem:[%s1291_s3 + $0x1d4] ss:$8 sps:$4 sm:$0xff]   ;;  %v949_v47 = vld [vmem:[%s1291_s3 + $0xd0] ss:$8 sps:$4 sm:$0xff]   ;;  %v54_v49 = vsub.s32 %v51_v42, %v1172_v43  ;;  %v951_v50 = vld [vmem:[%s1291_s3 + $0xc4] ss:$8 sps:$4 sm:$0xff]  }
  0x10   :  { %517 = vmatpush1.bf16.msra.mxu1 %v908_v15  ;;  %477 = vmatprep.subr.bf16.mxu0 %v909_v16  ;;  %v950_v48 = vld [vmem:[%s1291_s3 + $0x1d0] ss:$8 sps:$4 sm:$0xff]   ;;  %v953_v51 = vld [vmem:[%s1291_s3 + $0x1c4] ss:$8 sps:$4 sm:$0xff]   ;;  %v955_v55 = vld [vmem:[%s1291_s3 + $0xc0] ss:$8 sps:$4 sm:$0xff]  }
  0x11   :  { %518 = vmatprep.subr.bf16.mxu1 %v911_v17  ;;  %v46_v52 = vld [vmem:[%s1292_s0] sm:$0xff]  ;;  %v957_v57 = vld [vmem:[%s1291_s3 + $0xb4] ss:$8 sps:$4 sm:$0xff]   ;;  %v961_v63 = vld [vmem:[%s1291_s3 + $0xb0] ss:$8 sps:$4 sm:$0xff]   ;;  %v983_v16 = vmov 0.0  }
  0x12   :  { %v55_v53 = vrot.slane %v46_v52, %v54_v49  ;;  %v48_v54 = vcombine.high %v46_v52, %v46_v52  ;;  %v956_v56 = vld [vmem:[%s1291_s3 + $0x1c0] ss:$8 sps:$4 sm:$0xff]   ;;  %v959_v58 = vld [vmem:[%s1291_s3 + $0x1b4] ss:$8 sps:$4 sm:$0xff]   ;;  %v962_v0 = vld [vmem:[%s1291_s3 + $0x1b0] ss:$8 sps:$4 sm:$0xff]  }
  0x13   :  { %478 = vmatpush1.bf16.msra.mxu0 %v913_v18  ;;  %v963_v1 = vld [vmem:[%s1291_s3 + $0xa4] ss:$8 sps:$4 sm:$0xff]   ;;  %v967_v4 = vld [vmem:[%s1291_s3 + $0xa0] ss:$8 sps:$4 sm:$0xff]   ;;  %v969_v6 = vld [vmem:[%s1291_s3 + $0x94] ss:$8 sps:$4 sm:$0xff]  }
  0x14   :  { %519 = vmatpush1.bf16.msra.mxu1 %v914_v19  ;;  %479 = vmatprep.subr.bf16.mxu0 %v915_v20  ;;  %v63_v59 = vcombine.high %v55_v53, %v55_v53  ;;  %v62_v60 = vrot.slane %v48_v54, %v54_v49  ;;  %v965_v2 = vld [vmem:[%s1291_s3 + $0x1a4] ss:$8 sps:$4 sm:$0xff]   ;;  %v968_v5 = vld [vmem:[%s1291_s3 + $0x1a0] ss:$8 sps:$4 sm:$0xff]   ;;  %v971_v7 = vld [vmem:[%s1291_s3 + $0x194] ss:$8 sps:$4 sm:$0xff]   ;;  %v69_v14 = vpack.c.bf16 %v55_v53, %v55_v53 }
  0x15   :  { %520 = vmatprep.subr.bf16.mxu1 %v917_v21  ;;  %v973_v8 = vld [vmem:[%s1291_s3 + $0x90] ss:$8 sps:$4 sm:$0xff]   ;;  %v975_v10 = vld [vmem:[%s1291_s3 + $0x84] ss:$8 sps:$4 sm:$0xff]   ;;  %v979_v12 = vld [vmem:[%s1291_s3 + $0x80] ss:$8 sps:$4 sm:$0xff]  }
  0x16   :  { %v70_v61 = vpack.c.bf16 %v63_v59, %v63_v59  ;;  %v64_v62 = vcombine.high %v62_v60, %v62_v60  ;;  %v974_v9 = vld [vmem:[%s1291_s3 + $0x190] ss:$8 sps:$4 sm:$0xff]   ;;  %v977_v11 = vld [vmem:[%s1291_s3 + $0x184] ss:$8 sps:$4 sm:$0xff]   ;;  %v980_v13 = vld [vmem:[%s1291_s3 + $0x180] ss:$8 sps:$4 sm:$0xff]   ;;  %v71_v15 = vpack.c.bf16 %v62_v60, %v62_v60 }
  0x17   :  { %480 = vmatpush1.bf16.msra.mxu0 %v919_v22  ;;  %v558_v17 = vld [vmem:[%s1293_s5] sm:$0xf]  ;;  %v141_v21 = vsub.s32 0, %v1172_v43  ;;  %vm749_vm5 = vcmask 1041408   ;;  %vm776_vm8 = vcmask 254976   ;;  %vm763_vm9 = vcmask 91136  }
  0x18   :  { %521 = vmatpush1.bf16.msra.mxu1 %v920_v23  ;;  %481 = vmatprep.subr.bf16.mxu0 %v921_v24  ;;  %v72_v3 = vpack.c.bf16 %v64_v62, %v64_v62  ;;  %v648_v18 = vld [vmem:[%s1294_s7] sm:$0xf]  ;;  %v145_v23 = vsub.s32 1, %v1172_v43  ;;  %vm789_vm10 = vcmask 1024  }
  0x19   :  { %522 = vmatprep.subr.bf16.mxu1 %v923_v25  ;;  %501 = vmatprep.mubr.bf16.mxu0 %v70_v61  ;;  %v557_v19 = vld [vmem:[%s1295_s1] sm:$0x3] }
  0x1a   :  { %542 = vmatprep.mubr.bf16.mxu1 %v72_v3  ;;  %v647_v20 = vld [vmem:[%s1296_s2] sm:$0x3] }
  0x1b   :  { %482 = vmatpush1.bf16.msra.mxu0 %v925_v26  ;;  %v137_v22 = vld [vmem:[%s1297_s4] sm:$0x3] }
  0x1c   :  { %523 = vmatpush1.bf16.msra.mxu1 %v926_v27  ;;  %483 = vmatprep.subr.bf16.mxu0 %v927_v28  ;;  %v142_v24 = vrot.slane %v137_v22, %v141_v21  ;;  %v146_v25 = vrot.slane %v137_v22, %v145_v23  ;;  %v862_v42 = vld [vmem:[%s1300_s8] ss:$0 sm:$0xff] }
  0x1d   :  { %524 = vmatprep.subr.bf16.mxu1 %v929_v29  ;;  %v735_v29 = vld [vmem:[%s1298_s9] sm:$0x3] }
  0x1e   :  { %v740_v36 = vrot.slane %v735_v29, %v141_v21  ;;  %v744_v43 = vrot.slane %v735_v29, %v145_v23 }
  0x1f   :  { %484 = vmatpush1.bf16.msra.mxu0 %v931_v30 }
  0x20   :  { %525 = vmatpush1.bf16.msra.mxu1 %v932_v31  ;;  %485 = vmatprep.subr.bf16.mxu0 %v933_v32 }
  0x21   :  { %526 = vmatprep.subr.bf16.mxu1 %v935_v33 }
  0x23   :  { %486 = vmatpush2.bf16.msra.mxu0 %v937_v34 }
  0x24   :  { %527 = vmatpush2.bf16.msra.mxu1 %v938_v35  ;;  %487 = vmatprep.subr.bf16.mxu0 %v939_v39 }
  0x25   :  { %528 = vmatprep.subr.bf16.mxu1 %v941_v40 }
  0x27   :  { %488 = vmatpush2.bf16.msra.mxu0 %v943_v41  ;;  %v859_v41 = vld [vmem:[%s1299_s6] ss:$0 sm:$0xff] }
  0x28   :  { %529 = vmatpush2.bf16.msra.mxu1 %v944_v44  ;;  %489 = vmatprep.subr.bf16.mxu0 %v945_v45 }
  0x29   :  { %530 = vmatprep.subr.bf16.mxu1 %v947_v46 }
  0x2b   :  { %490 = vmatpush2.bf16.msra.mxu0 %v949_v47 }
  0x2c   :  { %531 = vmatpush2.bf16.msra.mxu1 %v950_v48  ;;  %491 = vmatprep.subr.bf16.mxu0 %v951_v50 }
  0x2d   :  { %532 = vmatprep.subr.bf16.mxu1 %v953_v51 }
  0x2f   :  { %492 = vmatpush2.bf16.msra.mxu0 %v955_v55  ;;  %v866_v55 = vld [vmem:[%s1301_s11] ss:$0 sm:$0xff] }
  0x30   :  { %533 = vmatpush2.bf16.msra.mxu1 %v956_v56  ;;  %493 = vmatprep.subr.bf16.mxu0 %v957_v57  ;;  %v865_v56 = vld [vmem:[%s1302_s10] ss:$0 sm:$0xff] }
  0x31   :  { %534 = vmatprep.subr.bf16.mxu1 %v959_v58 }
  0x33   :  { %494 = vmatpush2.bf16.msra.mxu0 %v961_v63 }
  0x34   :  { %535 = vmatpush2.bf16.msra.mxu1 %v962_v0  ;;  %495 = vmatprep.subr.bf16.mxu0 %v963_v1 }
  0x35   :  { %536 = vmatprep.subr.bf16.mxu1 %v965_v2 }
  0x37   :  { %496 = vmatpush2.bf16.msra.mxu0 %v967_v4  ;;  %v18_v4 = vstv %s1303_s12 }
  0x38   :  { %537 = vmatpush2.bf16.msra.mxu1 %v968_v5  ;;  %497 = vmatprep.subr.bf16.mxu0 %v969_v6  ;;  %19 = vst [vmem:[#allocation2] sm:$0x1] %v18_v4 }
  0x39   :  { %538 = vmatprep.subr.bf16.mxu1 %v971_v7 }
  0x3b   :  { %498 = vmatpush2.bf16.msra.mxu0 %v973_v8 }
  0x3c   :  { %539 = vmatpush2.bf16.msra.mxu1 %v974_v9  ;;  %499 = vmatprep.subr.bf16.mxu0 %v975_v10 }
  0x3d   :  { %540 = vmatprep.subr.bf16.mxu1 %v977_v11 }
  0x3f   :  { %500 = vmatpush2.bf16.msra.mxu0 %v979_v12  ;;  %v867_v9 = vld [vmem:[#allocation2] ss:$0 sm:$0xff] }
  0x40   :  { %541 = vmatpush2.bf16.msra.mxu1 %v980_v13  ;;  %872 = vmatprep.subr.mxu0 %v983_v16 }
  0x41   :  { %877 = vmatprep.subr.mxu1 %v983_v16 }
  0x42   :  { %502 = vmatmul.mubr.bf16.vlgmr.msra.gmra.mxu0 %v69_v14 }
  0x43   :  { %543 = vmatmul.mubr.bf16.vlgmr.msra.gmra.mxu1 %v71_v15  ;;  %873 = vmatpush3.msk.msra.mxu0 %vm570_vm0, %v558_v17 }
  0x44   :  { %878 = vmatpush3.msk.msra.mxu1 %vm570_vm0, %v648_v18  ;;  %874 = vmatprep.mubr.msk.f32.mxu0 %vm984_vm1, %v983_v16 }
  0x45   :  { %879 = vmatprep.mubr.msk.f32.mxu1 %vm984_vm1, %v983_v16 }
  0x4a   :  { %875 = vmatmul.mubr.msk.f32.vlgmr.msra.gmra.mxu0 %vm566_vm2, %v557_v19 }
  0x4b   :  { %880 = vmatmul.mubr.msk.f32.vlgmr.msra.gmra.mxu1 %vm566_vm2, %v647_v20 }
 0x102   :  { %v503_v26 = vpop.f32.mrf.mxu0 }
 0x103   :  { %v544_v27 = vpop.f32.mrf.mxu1  ;;  %v504_v28 = vadd.f32 %v503_v26, %v142_v24 }
 0x104   :  { %v505_v30 = vpop.f32.mrf.mxu0 }
 0x105   :  { %v546_v31 = vpop.f32.mrf.mxu1  ;;  %v545_v32 = vadd.f32 %v544_v27, %v504_v28  ;;  %v506_v33 = vadd.f32 %v505_v30, %v146_v25 }
 0x106   :  { %v507_v34 = vpop.f32.mrf.mxu0 }
 0x107   :  { %v548_v35 = vpop.f32.mrf.mxu1  ;;  %vm551_vm3 = vcmp.gt.f32.partialorder %v545_v32, 0.0  ;;  %v553_v37 = vmul.f32 0.01, %v545_v32  ;;  %v547_v38 = vadd.f32 %v546_v31, %v506_v33 }
 0x108   :  { %v508_v39 = vpop.f32.mrf.mxu0 }
 0x109   :  { %v549_v40 = vpop.f32.mrf.mxu1  ;;  %vm552_vm4 = vcmp.gt.f32.partialorder %v547_v38, 0.0  ;;  %v554_v44 = vmul.f32 0.01, %v547_v38  ;;  %v555_v45 = vsel %vm551_vm3, %v545_v32, %v553_v37 }
 0x10a   :  { %v640_v46 = vpop.f32.mrf.mxu0  ;;  %v747_v48 = vmul.f32 %v740_v36, %v555_v45 }
 0x10b   :  { %v728_v47 = vpop.f32.mrf.mxu1  ;;  %v641_v49 = vadd.f32 %v859_v41, %v640_v46  ;;  %v556_v51 = vsel %vm552_vm4, %v547_v38, %v554_v44 }
 0x10c   :  { %v729_v50 = vadd.f32 %v862_v42, %v728_v47  ;;  %v876_v52 = vpop.f32.mrf.mxu0  ;;  %v748_v54 = vmul.f32 %v744_v43, %v556_v51  ;;  %v750_v59 = vsel %vm749_vm5, %v747_v48, 0.0 }
 0x10d   :  { %v881_v53 = vpop.f32.mrf.mxu1  ;;  %vm644_vm6 = vcmp.gt.f32.partialorder %v641_v49, 0.0  ;;  %v645_v57 = vmul.f32 0.01, %v641_v49 }
 0x10e   :  { %v733_v58 = vmul.f32 0.01, %v729_v50  ;;  %vm732_vm7 = vcmp.gt.f32.partialorder %v729_v50, 0.0  ;;  %v751_v60 = vsel %vm749_vm5, %v748_v54, 0.0 }
 0x10f   :  { %v752_v61 = vadd.f32 %v751_v60, %v750_v59  ;;  %v646_v63 = vsel %vm644_vm6, %v641_v49, %v645_v57 }
 0x110   :  { %v734_v62 = vsel %vm732_vm7, %v729_v50, %v733_v58  ;;  %v762_v1 = vmul.f32 %v865_v56, %v646_v63 }
 0x111   :  { %v775_v0 = vmul.f32 %v866_v55, %v734_v62  ;;  %753 = vadd.xlane.f32.xlu0 %v752_v61 }
 0x112   :  { %v764_v3 = vsel %vm763_vm9, %v762_v1, 0.0 }
 0x113   :  { %v777_v2 = vsel %vm776_vm8, %v775_v0, 0.0 }
 0x114   :  { %778 = vadd.xlane.f32.xlu1 %v777_v2 }
 0x115   :  { %765 = vadd.xlane.f32.xlu0 %v764_v3 }
 0x19a   :  { %v754_v5 = vpop.xlane.xlu0 %753 }
 0x19d   :  { %v779_v8 = vpop.xlane.xlu1 %778 }
 0x19e   :  { %v766_v6 = vpop.xlane.xlu0 %765 }
 0x19f   :  { %v767_v7 = vadd.f32 %v766_v6, %v754_v5 }
 0x1a1   :  { %v780_v10 = vadd.f32 %v779_v8, %v767_v7 }
 0x1a3   :  { %v788_v11 = vadd.f32 %v867_v9, %v780_v10 }
 0x1a5   :  { %790 = vst.msk [vmem:[%s1304_s13] sm:$0x3] %vm789_vm10, %v788_v11 }

// kernel: critic_forward.6
= control target key start
LH: loop header
LB: loop body
LE: loop exit
PB: predicated region body
PF: predicated region fallthrough
CT: control target
= control target key end

     0   :  { %v1374_v36 = vmov 1983009808   ;;  %v26_v38 = vlaneseq  ;;  %s1811_s1 = inlined_call_operand.vmem [shape: bf16[512,512], index: 1, kind: input, shape index: {}]   ;;  %s1812_s0 = inlined_call_operand.vmem [shape: f32[2,512], index: 0, kind: input, shape index: {}]   ;;  %s1813_s2 = inlined_call_operand.vmem [shape: f32[1,512], index: 2, kind: input, shape index: {}]   ;;  %s1814_s3 = inlined_call_operand.vmem [shape: f32[2,512], index: 3, kind: output, shape index: {}]  }
   0x1   :  { %v1181_v0 = vld [vmem:[%s1811_s1 + $0xe4] ss:$16 sps:$4 sm:$0xff]   ;;  %v1185_v2 = vld [vmem:[%s1811_s1 + $0xe0] ss:$16 sps:$4 sm:$0xff]   ;;  %v24_v37 = vunpack.c.l.s4 %v1374_v36  ;;  %v1310_v36 = vld [vmem:[%s1811_s1 + $0x4c] ss:$16 sps:$4 sm:$0xff]  }
   0x2   :  { %v1183_v1 = vld [vmem:[%s1811_s1 + $0x2e4] ss:$16 sps:$4 sm:$0xff]   ;;  %815 = vmatprep.subr.bf16.mxu0 %v1181_v0  ;;  %v1186_v3 = vld [vmem:[%s1811_s1 + $0x2e0] ss:$16 sps:$4 sm:$0xff]   ;;  %v1512_v43 = vshrl.u32 %v26_v38, 7 }
   0x3   :  { %856 = vmatprep.subr.bf16.mxu1 %v1183_v1  ;;  %v1187_v4 = vld [vmem:[%s1811_s1 + $0xc4] ss:$16 sps:$4 sm:$0xff]   ;;  %816 = vmatpush1.bf16.msra.mxu0 %v1185_v2  ;;  %v1191_v6 = vld [vmem:[%s1811_s1 + $0xc0] ss:$16 sps:$4 sm:$0xff]   ;;  %v25_v42 = vunpack.c.0.s8 %v24_v37  ;;  %v1313_v37 = vld [vmem:[%s1811_s1 + $0x24c] ss:$16 sps:$4 sm:$0xff]  }
   0x4   :  { %857 = vmatpush1.bf16.msra.mxu1 %v1186_v3  ;;  %v1189_v5 = vld [vmem:[%s1811_s1 + $0x2c4] ss:$16 sps:$4 sm:$0xff]   ;;  %817 = vmatprep.subr.bf16.mxu0 %v1187_v4  ;;  %v1192_v7 = vld [vmem:[%s1811_s1 + $0x2c0] ss:$16 sps:$4 sm:$0xff]   ;;  %v1308_v38 = vld [vmem:[%s1811_s1 + $0x48] ss:$16 sps:$4 sm:$0xff]  }
   0x5   :  { %858 = vmatprep.subr.bf16.mxu1 %v1189_v5  ;;  %v1193_v8 = vld [vmem:[%s1811_s1 + $0xa4] ss:$16 sps:$4 sm:$0xff]   ;;  %v1197_v10 = vld [vmem:[%s1811_s1 + $0xa0] ss:$16 sps:$4 sm:$0xff]   ;;  %v1530_v49 = vsub.s32 %v25_v42, %v1512_v43  ;;  %v1314_v42 = vld [vmem:[%s1811_s1 + $0x28] ss:$16 sps:$4 sm:$0xff]  }
   0x6   :  { %v1195_v9 = vld [vmem:[%s1811_s1 + $0x2a4] ss:$16 sps:$4 sm:$0xff]   ;;  %v1198_v11 = vld [vmem:[%s1811_s1 + $0x2a0] ss:$16 sps:$4 sm:$0xff]  }
   0x7   :  { %818 = vmatpush1.bf16.msra.mxu0 %v1191_v6  ;;  %v1199_v12 = vld [vmem:[%s1811_s1 + $0x84] ss:$16 sps:$4 sm:$0xff]   ;;  %v1203_v14 = vld [vmem:[%s1811_s1 + $0x80] ss:$16 sps:$4 sm:$0xff]  }
   0x8   :  { %859 = vmatpush1.bf16.msra.mxu1 %v1192_v7  ;;  %819 = vmatprep.subr.bf16.mxu0 %v1193_v8  ;;  %v1201_v13 = vld [vmem:[%s1811_s1 + $0x284] ss:$16 sps:$4 sm:$0xff]   ;;  %v1204_v15 = vld [vmem:[%s1811_s1 + $0x280] ss:$16 sps:$4 sm:$0xff]  }
   0x9   :  { %860 = vmatprep.subr.bf16.mxu1 %v1195_v9  ;;  %v1205_v16 = vld [vmem:[%s1811_s1 + $0x64] ss:$16 sps:$4 sm:$0xff]   ;;  %v1209_v18 = vld [vmem:[%s1811_s1 + $0x60] ss:$16 sps:$4 sm:$0xff]  }
   0xa   :  { %v1207_v17 = vld [vmem:[%s1811_s1 + $0x264] ss:$16 sps:$4 sm:$0xff]   ;;  %v1210_v19 = vld [vmem:[%s1811_s1 + $0x260] ss:$16 sps:$4 sm:$0xff]  }
   0xb   :  { %820 = vmatpush1.bf16.msra.mxu0 %v1197_v10  ;;  %v1211_v20 = vld [vmem:[%s1811_s1 + $0x44] ss:$16 sps:$4 sm:$0xff]   ;;  %v1215_v22 = vld [vmem:[%s1811_s1 + $0x40] ss:$16 sps:$4 sm:$0xff]  }
   0xc   :  { %861 = vmatpush1.bf16.msra.mxu1 %v1198_v11  ;;  %821 = vmatprep.subr.bf16.mxu0 %v1199_v12  ;;  %v1213_v21 = vld [vmem:[%s1811_s1 + $0x244] ss:$16 sps:$4 sm:$0xff]   ;;  %v1216_v23 = vld [vmem:[%s1811_s1 + $0x240] ss:$16 sps:$4 sm:$0xff]  }
   0xd   :  { %862 = vmatprep.subr.bf16.mxu1 %v1201_v13  ;;  %v1217_v24 = vld [vmem:[%s1811_s1 + $0x24] ss:$16 sps:$4 sm:$0xff]   ;;  %v1221_v26 = vld [vmem:[%s1811_s1 + $0x20] ss:$16 sps:$4 sm:$0xff]  }
   0xe   :  { %v1219_v25 = vld [vmem:[%s1811_s1 + $0x224] ss:$16 sps:$4 sm:$0xff]   ;;  %v1222_v27 = vld [vmem:[%s1811_s1 + $0x220] ss:$16 sps:$4 sm:$0xff]  }
   0xf   :  { %822 = vmatpush1.bf16.msra.mxu0 %v1203_v14  ;;  %v1223_v28 = vld [vmem:[%s1811_s1 + $0x4] ss:$16 sps:$4 sm:$0xff]   ;;  %v1227_v30 = vld [vmem:[%s1811_s1] ss:$16 sps:$4 sm:$0xff]   ;;  %v1280_v14 = vld [vmem:[%s1811_s1 + $0xec] ss:$16 sps:$4 sm:$0xff]  }
  0x10   :  { %863 = vmatpush1.bf16.msra.mxu1 %v1204_v15  ;;  %823 = vmatprep.subr.bf16.mxu0 %v1205_v16  ;;  %v1225_v29 = vld [vmem:[%s1811_s1 + $0x204] ss:$16 sps:$4 sm:$0xff]   ;;  %v1228_v31 = vld [vmem:[%s1811_s1 + $0x200] ss:$16 sps:$4 sm:$0xff]   ;;  %v1283_v15 = vld [vmem:[%s1811_s1 + $0x2ec] ss:$16 sps:$4 sm:$0xff]  }
  0x11   :  { %864 = vmatprep.subr.bf16.mxu1 %v1207_v17  ;;  %v1229_v32 = vld [vmem:[%s1811_s1 + $0x1e4] ss:$16 sps:$4 sm:$0xff]   ;;  %v1233_v34 = vld [vmem:[%s1811_s1 + $0x1e0] ss:$16 sps:$4 sm:$0xff]  }
  0x12   :  { %v1231_v33 = vld [vmem:[%s1811_s1 + $0x3e4] ss:$16 sps:$4 sm:$0xff]   ;;  %v1234_v35 = vld [vmem:[%s1811_s1 + $0x3e0] ss:$16 sps:$4 sm:$0xff]  }
  0x13   :  { %824 = vmatpush1.bf16.msra.mxu0 %v1209_v18  ;;  %v1235_v39 = vld [vmem:[%s1811_s1 + $0x1c4] ss:$16 sps:$4 sm:$0xff]   ;;  %v1239_v41 = vld [vmem:[%s1811_s1 + $0x1c0] ss:$16 sps:$4 sm:$0xff]   ;;  %v1278_v18 = vld [vmem:[%s1811_s1 + $0xe8] ss:$16 sps:$4 sm:$0xff]  }
  0x14   :  { %865 = vmatpush1.bf16.msra.mxu1 %v1210_v19  ;;  %825 = vmatprep.subr.bf16.mxu0 %v1211_v20  ;;  %v1237_v40 = vld [vmem:[%s1811_s1 + $0x3c4] ss:$16 sps:$4 sm:$0xff]   ;;  %v1240_v44 = vld [vmem:[%s1811_s1 + $0x3c0] ss:$16 sps:$4 sm:$0xff]   ;;  %v1281_v19 = vld [vmem:[%s1811_s1 + $0x2e8] ss:$16 sps:$4 sm:$0xff]  }
  0x15   :  { %866 = vmatprep.subr.bf16.mxu1 %v1213_v21  ;;  %v1241_v45 = vld [vmem:[%s1811_s1 + $0x1a4] ss:$16 sps:$4 sm:$0xff]   ;;  %v1245_v47 = vld [vmem:[%s1811_s1 + $0x1a0] ss:$16 sps:$4 sm:$0xff]   ;;  %v1286_v20 = vld [vmem:[%s1811_s1 + $0xcc] ss:$16 sps:$4 sm:$0xff]  }
  0x16   :  { %v1243_v46 = vld [vmem:[%s1811_s1 + $0x3a4] ss:$16 sps:$4 sm:$0xff]   ;;  %v1246_v48 = vld [vmem:[%s1811_s1 + $0x3a0] ss:$16 sps:$4 sm:$0xff]   ;;  %v1289_v21 = vld [vmem:[%s1811_s1 + $0x2cc] ss:$16 sps:$4 sm:$0xff]  }
  0x17   :  { %826 = vmatpush1.bf16.msra.mxu0 %v1215_v22  ;;  %v1247_v50 = vld [vmem:[%s1811_s1 + $0x184] ss:$16 sps:$4 sm:$0xff]   ;;  %v1251_v53 = vld [vmem:[%s1811_s1 + $0x180] ss:$16 sps:$4 sm:$0xff]   ;;  %v1284_v22 = vld [vmem:[%s1811_s1 + $0xc8] ss:$16 sps:$4 sm:$0xff]  }
  0x18   :  { %867 = vmatpush1.bf16.msra.mxu1 %v1216_v23  ;;  %827 = vmatprep.subr.bf16.mxu0 %v1217_v24  ;;  %v1249_v51 = vld [vmem:[%s1811_s1 + $0x384] ss:$16 sps:$4 sm:$0xff]   ;;  %v1252_v56 = vld [vmem:[%s1811_s1 + $0x380] ss:$16 sps:$4 sm:$0xff]   ;;  %v1287_v23 = vld [vmem:[%s1811_s1 + $0x2c8] ss:$16 sps:$4 sm:$0xff]  }
  0x19   :  { %868 = vmatprep.subr.bf16.mxu1 %v1219_v25  ;;  %v20_v52 = vld [vmem:[%s1812_s0] sm:$0xff]  ;;  %v1292_v24 = vld [vmem:[%s1811_s1 + $0xac] ss:$16 sps:$4 sm:$0xff]  }
  0x1a   :  { %v29_v54 = vrot.slane %v20_v52, %v1530_v49  ;;  %v22_v55 = vcombine.high %v20_v52, %v20_v52  ;;  %v1253_v57 = vld [vmem:[%s1811_s1 + $0x164] ss:$16 sps:$4 sm:$0xff]   ;;  %v1257_v61 = vld [vmem:[%s1811_s1 + $0x160] ss:$16 sps:$4 sm:$0xff]   ;;  %v1295_v25 = vld [vmem:[%s1811_s1 + $0x2ac] ss:$16 sps:$4 sm:$0xff]  }
  0x1b   :  { %828 = vmatpush1.bf16.msra.mxu0 %v1221_v26  ;;  %v1255_v58 = vld [vmem:[%s1811_s1 + $0x364] ss:$16 sps:$4 sm:$0xff]   ;;  %v1258_v0 = vld [vmem:[%s1811_s1 + $0x360] ss:$16 sps:$4 sm:$0xff]   ;;  %v1290_v26 = vld [vmem:[%s1811_s1 + $0xa8] ss:$16 sps:$4 sm:$0xff]  }
  0x1c   :  { %869 = vmatpush1.bf16.msra.mxu1 %v1222_v27  ;;  %829 = vmatprep.subr.bf16.mxu0 %v1223_v28  ;;  %v37_v59 = vcombine.high %v29_v54, %v29_v54  ;;  %v36_v60 = vrot.slane %v22_v55, %v1530_v49  ;;  %v1259_v1 = vld [vmem:[%s1811_s1 + $0x144] ss:$16 sps:$4 sm:$0xff]   ;;  %v1263_v4 = vld [vmem:[%s1811_s1 + $0x140] ss:$16 sps:$4 sm:$0xff]   ;;  %v1603_v16 = vpack.c.bf16 %v29_v54, %v29_v54  ;;  %v1293_v27 = vld [vmem:[%s1811_s1 + $0x2a8] ss:$16 sps:$4 sm:$0xff]  }
  0x1d   :  { %870 = vmatprep.subr.bf16.mxu1 %v1225_v29  ;;  %v1261_v2 = vld [vmem:[%s1811_s1 + $0x344] ss:$16 sps:$4 sm:$0xff]   ;;  %v1264_v5 = vld [vmem:[%s1811_s1 + $0x340] ss:$16 sps:$4 sm:$0xff]   ;;  %v1298_v28 = vld [vmem:[%s1811_s1 + $0x8c] ss:$16 sps:$4 sm:$0xff]  }
  0x1e   :  { %v44_v62 = vpack.c.bf16 %v37_v59, %v37_v59  ;;  %v38_v63 = vcombine.high %v36_v60, %v36_v60  ;;  %v1265_v6 = vld [vmem:[%s1811_s1 + $0x124] ss:$16 sps:$4 sm:$0xff]   ;;  %v1269_v8 = vld [vmem:[%s1811_s1 + $0x120] ss:$16 sps:$4 sm:$0xff]   ;;  %v1605_v17 = vpack.c.bf16 %v36_v60, %v36_v60  ;;  %v1301_v29 = vld [vmem:[%s1811_s1 + $0x28c] ss:$16 sps:$4 sm:$0xff]  }
  0x1f   :  { %830 = vmatpush1.bf16.msra.mxu0 %v1227_v30  ;;  %v1267_v7 = vld [vmem:[%s1811_s1 + $0x324] ss:$16 sps:$4 sm:$0xff]   ;;  %v1270_v9 = vld [vmem:[%s1811_s1 + $0x320] ss:$16 sps:$4 sm:$0xff]   ;;  %v1296_v30 = vld [vmem:[%s1811_s1 + $0x88] ss:$16 sps:$4 sm:$0xff]  }
  0x20   :  { %871 = vmatpush1.bf16.msra.mxu1 %v1228_v31  ;;  %831 = vmatprep.subr.bf16.mxu0 %v1229_v32  ;;  %v46_v3 = vpack.c.bf16 %v38_v63, %v38_v63  ;;  %v1271_v10 = vld [vmem:[%s1811_s1 + $0x104] ss:$16 sps:$4 sm:$0xff]   ;;  %v1275_v12 = vld [vmem:[%s1811_s1 + $0x100] ss:$16 sps:$4 sm:$0xff]   ;;  %v1299_v31 = vld [vmem:[%s1811_s1 + $0x288] ss:$16 sps:$4 sm:$0xff]  }
  0x21   :  { %872 = vmatprep.subr.bf16.mxu1 %v1231_v33  ;;  %847 = vmatprep.mubr.bf16.mxu0 %v44_v62  ;;  %v1273_v11 = vld [vmem:[%s1811_s1 + $0x304] ss:$16 sps:$4 sm:$0xff]   ;;  %v1276_v13 = vld [vmem:[%s1811_s1 + $0x300] ss:$16 sps:$4 sm:$0xff]   ;;  %v1304_v32 = vld [vmem:[%s1811_s1 + $0x6c] ss:$16 sps:$4 sm:$0xff]  }
  0x22   :  { %888 = vmatprep.mubr.bf16.mxu1 %v46_v3  ;;  %v1307_v33 = vld [vmem:[%s1811_s1 + $0x26c] ss:$16 sps:$4 sm:$0xff]   ;;  %v1326_v52 = vld [vmem:[%s1811_s1 + $0x1e8] ss:$16 sps:$4 sm:$0xff]  }
  0x23   :  { %832 = vmatpush2.bf16.msra.mxu0 %v1233_v34  ;;  %v1302_v34 = vld [vmem:[%s1811_s1 + $0x68] ss:$16 sps:$4 sm:$0xff]   ;;  %v1334_v54 = vld [vmem:[%s1811_s1 + $0x1cc] ss:$16 sps:$4 sm:$0xff]  }
  0x24   :  { %873 = vmatpush2.bf16.msra.mxu1 %v1234_v35  ;;  %833 = vmatprep.subr.bf16.mxu0 %v1235_v39  ;;  %v1305_v35 = vld [vmem:[%s1811_s1 + $0x268] ss:$16 sps:$4 sm:$0xff]   ;;  %v1337_v55 = vld [vmem:[%s1811_s1 + $0x3cc] ss:$16 sps:$4 sm:$0xff]  }
  0x25   :  { %874 = vmatprep.subr.bf16.mxu1 %v1237_v40  ;;  %v1311_v39 = vld [vmem:[%s1811_s1 + $0x248] ss:$16 sps:$4 sm:$0xff]   ;;  %v1316_v40 = vld [vmem:[%s1811_s1 + $0x2c] ss:$16 sps:$4 sm:$0xff]  }
  0x26   :  { %v1343_v59 = vld [vmem:[%s1811_s1 + $0x3ac] ss:$16 sps:$4 sm:$0xff]   ;;  %v1338_v60 = vld [vmem:[%s1811_s1 + $0x1a8] ss:$16 sps:$4 sm:$0xff]  }
  0x27   :  { %834 = vmatpush2.bf16.msra.mxu0 %v1239_v41  ;;  %v1319_v41 = vld [vmem:[%s1811_s1 + $0x22c] ss:$16 sps:$4 sm:$0xff]  }
  0x28   :  { %875 = vmatpush2.bf16.msra.mxu1 %v1240_v44  ;;  %835 = vmatprep.subr.bf16.mxu0 %v1241_v45  ;;  %v1317_v44 = vld [vmem:[%s1811_s1 + $0x228] ss:$16 sps:$4 sm:$0xff]   ;;  %v1322_v45 = vld [vmem:[%s1811_s1 + $0xc] ss:$16 sps:$4 sm:$0xff]  }
  0x29   :  { %876 = vmatprep.subr.bf16.mxu1 %v1243_v46  ;;  %v1325_v46 = vld [vmem:[%s1811_s1 + $0x20c] ss:$16 sps:$4 sm:$0xff]  }
  0x2a   :  { %v1349_v63 = vld [vmem:[%s1811_s1 + $0x38c] ss:$16 sps:$4 sm:$0xff]  }
  0x2b   :  { %836 = vmatpush2.bf16.msra.mxu0 %v1245_v47  ;;  %v1320_v47 = vld [vmem:[%s1811_s1 + $0x8] ss:$16 sps:$4 sm:$0xff]  }
  0x2c   :  { %877 = vmatpush2.bf16.msra.mxu1 %v1246_v48  ;;  %837 = vmatprep.subr.bf16.mxu0 %v1247_v50  ;;  %v1323_v48 = vld [vmem:[%s1811_s1 + $0x208] ss:$16 sps:$4 sm:$0xff]   ;;  %v1328_v50 = vld [vmem:[%s1811_s1 + $0x1ec] ss:$16 sps:$4 sm:$0xff]  }
  0x2d   :  { %878 = vmatprep.subr.bf16.mxu1 %v1249_v51  ;;  %v1331_v51 = vld [vmem:[%s1811_s1 + $0x3ec] ss:$16 sps:$4 sm:$0xff]  }
  0x2f   :  { %838 = vmatpush2.bf16.msra.mxu0 %v1251_v53  ;;  %v1329_v53 = vld [vmem:[%s1811_s1 + $0x3e8] ss:$16 sps:$4 sm:$0xff]  }
  0x30   :  { %879 = vmatpush2.bf16.msra.mxu1 %v1252_v56  ;;  %839 = vmatprep.subr.bf16.mxu0 %v1253_v57  ;;  %v1332_v56 = vld [vmem:[%s1811_s1 + $0x1c8] ss:$16 sps:$4 sm:$0xff]  }
  0x31   :  { %880 = vmatprep.subr.bf16.mxu1 %v1255_v58  ;;  %v1335_v57 = vld [vmem:[%s1811_s1 + $0x3c8] ss:$16 sps:$4 sm:$0xff]   ;;  %v1340_v58 = vld [vmem:[%s1811_s1 + $0x1ac] ss:$16 sps:$4 sm:$0xff]  }
  0x33   :  { %840 = vmatpush2.bf16.msra.mxu0 %v1257_v61  ;;  %v1341_v61 = vld [vmem:[%s1811_s1 + $0x3a8] ss:$16 sps:$4 sm:$0xff]  }
  0x34   :  { %881 = vmatpush2.bf16.msra.mxu1 %v1258_v0  ;;  %841 = vmatprep.subr.bf16.mxu0 %v1259_v1  ;;  %v1344_v0 = vld [vmem:[%s1811_s1 + $0x188] ss:$16 sps:$4 sm:$0xff]  }
  0x35   :  { %882 = vmatprep.subr.bf16.mxu1 %v1261_v2  ;;  %v1347_v1 = vld [vmem:[%s1811_s1 + $0x388] ss:$16 sps:$4 sm:$0xff]   ;;  %v1352_v2 = vld [vmem:[%s1811_s1 + $0x16c] ss:$16 sps:$4 sm:$0xff]  }
  0x37   :  { %842 = vmatpush2.bf16.msra.mxu0 %v1263_v4  ;;  %v1350_v4 = vld [vmem:[%s1811_s1 + $0x168] ss:$16 sps:$4 sm:$0xff]  }
  0x38   :  { %883 = vmatpush2.bf16.msra.mxu1 %v1264_v5  ;;  %843 = vmatprep.subr.bf16.mxu0 %v1265_v6  ;;  %v1353_v5 = vld [vmem:[%s1811_s1 + $0x368] ss:$16 sps:$4 sm:$0xff]   ;;  %v1358_v6 = vld [vmem:[%s1811_s1 + $0x14c] ss:$16 sps:$4 sm:$0xff]  }
  0x39   :  { %884 = vmatprep.subr.bf16.mxu1 %v1267_v7  ;;  %v1361_v7 = vld [vmem:[%s1811_s1 + $0x34c] ss:$16 sps:$4 sm:$0xff]  }
  0x3b   :  { %844 = vmatpush2.bf16.msra.mxu0 %v1269_v8  ;;  %v1356_v8 = vld [vmem:[%s1811_s1 + $0x148] ss:$16 sps:$4 sm:$0xff]  }
  0x3c   :  { %885 = vmatpush2.bf16.msra.mxu1 %v1270_v9  ;;  %845 = vmatprep.subr.bf16.mxu0 %v1271_v10  ;;  %v1359_v9 = vld [vmem:[%s1811_s1 + $0x348] ss:$16 sps:$4 sm:$0xff]   ;;  %v1364_v10 = vld [vmem:[%s1811_s1 + $0x12c] ss:$16 sps:$4 sm:$0xff]  }
  0x3d   :  { %886 = vmatprep.subr.bf16.mxu1 %v1273_v11  ;;  %v1367_v11 = vld [vmem:[%s1811_s1 + $0x32c] ss:$16 sps:$4 sm:$0xff]  }
  0x3f   :  { %846 = vmatpush2.bf16.msra.mxu0 %v1275_v12  ;;  %v1362_v12 = vld [vmem:[%s1811_s1 + $0x128] ss:$16 sps:$4 sm:$0xff]  }
  0x40   :  { %887 = vmatpush2.bf16.msra.mxu1 %v1276_v13  ;;  %897 = vmatprep.subr.bf16.mxu0 %v1280_v14  ;;  %v1365_v13 = vld [vmem:[%s1811_s1 + $0x328] ss:$16 sps:$4 sm:$0xff]   ;;  %v1370_v14 = vld [vmem:[%s1811_s1 + $0x10c] ss:$16 sps:$4 sm:$0xff]  }
  0x41   :  { %938 = vmatprep.subr.bf16.mxu1 %v1283_v15  ;;  %v1373_v15 = vld [vmem:[%s1811_s1 + $0x30c] ss:$16 sps:$4 sm:$0xff]  }
  0x42   :  { %848 = vmatmul.mubr.bf16.vlgmr.msra.gmra.mxu0 %v1603_v16 }
  0x43   :  { %889 = vmatmul.mubr.bf16.vlgmr.msra.gmra.mxu1 %v1605_v17  ;;  %898 = vmatpush1.bf16.msra.mxu0 %v1278_v18  ;;  %v1368_v18 = vld [vmem:[%s1811_s1 + $0x108] ss:$16 sps:$4 sm:$0xff]  }
  0x44   :  { %939 = vmatpush1.bf16.msra.mxu1 %v1281_v19  ;;  %899 = vmatprep.subr.bf16.mxu0 %v1286_v20  ;;  %v1371_v19 = vld [vmem:[%s1811_s1 + $0x308] ss:$16 sps:$4 sm:$0xff]  }
  0x45   :  { %940 = vmatprep.subr.bf16.mxu1 %v1289_v21  ;;  %929 = vmatprep.mubr.bf16.mxu0 %v44_v62  ;;  %v1346_v62 = vld [vmem:[%s1811_s1 + $0x18c] ss:$16 sps:$4 sm:$0xff]  }
  0x46   :  { %970 = vmatprep.mubr.bf16.mxu1 %v46_v3  ;;  %v1355_v3 = vld [vmem:[%s1811_s1 + $0x36c] ss:$16 sps:$4 sm:$0xff]  }
  0x47   :  { %900 = vmatpush1.bf16.msra.mxu0 %v1284_v22 }
  0x48   :  { %941 = vmatpush1.bf16.msra.mxu1 %v1287_v23  ;;  %901 = vmatprep.subr.bf16.mxu0 %v1292_v24 }
  0x49   :  { %942 = vmatprep.subr.bf16.mxu1 %v1295_v25 }
  0x4b   :  { %902 = vmatpush1.bf16.msra.mxu0 %v1290_v26 }
  0x4c   :  { %943 = vmatpush1.bf16.msra.mxu1 %v1293_v27  ;;  %903 = vmatprep.subr.bf16.mxu0 %v1298_v28 }
  0x4d   :  { %944 = vmatprep.subr.bf16.mxu1 %v1301_v29 }
  0x4f   :  { %904 = vmatpush1.bf16.msra.mxu0 %v1296_v30 }
  0x50   :  { %945 = vmatpush1.bf16.msra.mxu1 %v1299_v31  ;;  %905 = vmatprep.subr.bf16.mxu0 %v1304_v32  ;;  %v1011_v31 = vsub.s32 0, %v1512_v43  ;;  %v1015_v32 = vsub.s32 1, %v1512_v43 }
  0x51   :  { %946 = vmatprep.subr.bf16.mxu1 %v1307_v33  ;;  %v1019_v33 = vsub.s32 2, %v1512_v43 }
  0x53   :  { %906 = vmatpush1.bf16.msra.mxu0 %v1302_v34 }
  0x54   :  { %947 = vmatpush1.bf16.msra.mxu1 %v1305_v35  ;;  %907 = vmatprep.subr.bf16.mxu0 %v1310_v36 }
  0x55   :  { %948 = vmatprep.subr.bf16.mxu1 %v1313_v37 }
  0x57   :  { %908 = vmatpush1.bf16.msra.mxu0 %v1308_v38 }
  0x58   :  { %949 = vmatpush1.bf16.msra.mxu1 %v1311_v39  ;;  %909 = vmatprep.subr.bf16.mxu0 %v1316_v40 }
  0x59   :  { %950 = vmatprep.subr.bf16.mxu1 %v1319_v41 }
  0x5b   :  { %910 = vmatpush1.bf16.msra.mxu0 %v1314_v42 }
  0x5c   :  { %951 = vmatpush1.bf16.msra.mxu1 %v1317_v44  ;;  %911 = vmatprep.subr.bf16.mxu0 %v1322_v45 }
  0x5d   :  { %952 = vmatprep.subr.bf16.mxu1 %v1325_v46 }
  0x5f   :  { %912 = vmatpush1.bf16.msra.mxu0 %v1320_v47 }
  0x60   :  { %953 = vmatpush1.bf16.msra.mxu1 %v1323_v48  ;;  %913 = vmatprep.subr.bf16.mxu0 %v1328_v50 }
  0x61   :  { %954 = vmatprep.subr.bf16.mxu1 %v1331_v51 }
  0x63   :  { %914 = vmatpush2.bf16.msra.mxu0 %v1326_v52 }
  0x64   :  { %955 = vmatpush2.bf16.msra.mxu1 %v1329_v53  ;;  %915 = vmatprep.subr.bf16.mxu0 %v1334_v54 }
  0x65   :  { %956 = vmatprep.subr.bf16.mxu1 %v1337_v55 }
  0x67   :  { %916 = vmatpush2.bf16.msra.mxu0 %v1332_v56 }
  0x68   :  { %957 = vmatpush2.bf16.msra.mxu1 %v1335_v57  ;;  %917 = vmatprep.subr.bf16.mxu0 %v1340_v58 }
  0x69   :  { %958 = vmatprep.subr.bf16.mxu1 %v1343_v59 }
  0x6b   :  { %918 = vmatpush2.bf16.msra.mxu0 %v1338_v60 }
  0x6c   :  { %959 = vmatpush2.bf16.msra.mxu1 %v1341_v61  ;;  %919 = vmatprep.subr.bf16.mxu0 %v1346_v62 }
  0x6d   :  { %960 = vmatprep.subr.bf16.mxu1 %v1349_v63 }
  0x6f   :  { %920 = vmatpush2.bf16.msra.mxu0 %v1344_v0 }
  0x70   :  { %961 = vmatpush2.bf16.msra.mxu1 %v1347_v1  ;;  %921 = vmatprep.subr.bf16.mxu0 %v1352_v2 }
  0x71   :  { %962 = vmatprep.subr.bf16.mxu1 %v1355_v3 }
  0x73   :  { %922 = vmatpush2.bf16.msra.mxu0 %v1350_v4 }
  0x74   :  { %963 = vmatpush2.bf16.msra.mxu1 %v1353_v5  ;;  %923 = vmatprep.subr.bf16.mxu0 %v1358_v6 }
  0x75   :  { %964 = vmatprep.subr.bf16.mxu1 %v1361_v7 }
  0x77   :  { %924 = vmatpush2.bf16.msra.mxu0 %v1356_v8 }
  0x78   :  { %965 = vmatpush2.bf16.msra.mxu1 %v1359_v9  ;;  %925 = vmatprep.subr.bf16.mxu0 %v1364_v10 }
  0x79   :  { %966 = vmatprep.subr.bf16.mxu1 %v1367_v11 }
  0x7b   :  { %926 = vmatpush2.bf16.msra.mxu0 %v1362_v12 }
  0x7c   :  { %967 = vmatpush2.bf16.msra.mxu1 %v1365_v13  ;;  %927 = vmatprep.subr.bf16.mxu0 %v1370_v14 }
  0x7d   :  { %968 = vmatprep.subr.bf16.mxu1 %v1373_v15 }
  0x7f   :  { %928 = vmatpush2.bf16.msra.mxu0 %v1368_v18 }
  0x80   :  { %969 = vmatpush2.bf16.msra.mxu1 %v1371_v19 }
  0x82   :  { %930 = vmatmul.mubr.bf16.vlgmr.msra.gmra.mxu0 %v1603_v16  ;;  %v1023_v16 = vsub.s32 3, %v1512_v43 }
  0x83   :  { %971 = vmatmul.mubr.bf16.vlgmr.msra.gmra.mxu1 %v1605_v17  ;;  %v1007_v17 = vld [vmem:[%s1813_s2] sm:$0xf] }
  0x84   :  { %v1012_v34 = vrot.slane %v1007_v17, %v1011_v31  ;;  %v1016_v35 = vrot.slane %v1007_v17, %v1015_v32  ;;  %v1020_v36 = vrot.slane %v1007_v17, %v1019_v33  ;;  %v1024_v37 = vrot.slane %v1007_v17, %v1023_v16 }
  0x86   :  { %v1025_v38 = vcombine.low %v1012_v34, %v1016_v35  ;;  %v1026_v39 = vcombine.low %v1020_v36, %v1024_v37 }
  0x88   :  { %v1033_v47 = vrot.slane %v1025_v38, %v1530_v49  ;;  %v1040_v43 = vrot.slane %v1026_v39, %v1530_v49 }
  0x8a   :  { %v1041_v56 = vcombine.low %v1033_v47, %v1040_v43 }
 0x102   :  { %v849_v20 = vpop.f32.mrf.mxu0 }
 0x103   :  { %v890_v21 = vpop.f32.mrf.mxu1 }
 0x104   :  { %v891_v22 = vadd.f32 %v890_v21, %v849_v20  ;;  %v851_v23 = vpop.f32.mrf.mxu0 }
 0x105   :  { %v892_v24 = vpop.f32.mrf.mxu1 }
 0x106   :  { %v893_v25 = vadd.f32 %v892_v24, %v851_v23  ;;  %v853_v26 = vpop.f32.mrf.mxu0 }
 0x107   :  { %v894_v27 = vpop.f32.mrf.mxu1 }
 0x108   :  { %v983_v28 = vcombine.low %v891_v22, %v893_v25  ;;  %v854_v29 = vpop.f32.mrf.mxu0 }
 0x109   :  { %v895_v30 = vpop.f32.mrf.mxu1 }
 0x10a   :  { %v991_v54 = vrot.slane %v983_v28, %v1530_v49 }
 0x142   :  { %v931_v40 = vpop.f32.mrf.mxu0 }
 0x143   :  { %v972_v41 = vpop.f32.mrf.mxu1 }
 0x144   :  { %v933_v42 = vpop.f32.mrf.mxu0  ;;  %v973_v45 = vadd.f32 %v972_v41, %v931_v40 }
 0x145   :  { %v974_v44 = vpop.f32.mrf.mxu1 }
 0x146   :  { %v975_v46 = vadd.f32 %v974_v44, %v933_v42  ;;  %v935_v48 = vpop.f32.mrf.mxu0 }
 0x147   :  { %v976_v50 = vpop.f32.mrf.mxu1 }
 0x148   :  { %v984_v51 = vcombine.low %v973_v45, %v975_v46  ;;  %v936_v52 = vpop.f32.mrf.mxu0 }
 0x149   :  { %v977_v53 = vpop.f32.mrf.mxu1 }
 0x14a   :  { %v998_v55 = vrot.slane %v984_v51, %v1530_v49 }
 0x14c   :  { %v999_v57 = vcombine.low %v991_v54, %v998_v55 }
 0x14e   :  { %v1043_v58 = vadd.f32 %v1041_v56, %v999_v57 }
 0x150   :  { %vm1044_vm0 = vcmp.gt.f32.partialorder %v1043_v58, 0.0  ;;  %v1045_v59 = vmul.f32 0.01, %v1043_v58 }
 0x152   :  { %v1046_v60 = vsel %vm1044_vm0, %v1043_v58, %v1045_v59 }
 0x153   :  { %1047 = vst [vmem:[%s1814_s3] sm:$0xff] %v1046_v60 }

</bundles_post_ra>
